<compile_context>
chip_gen: v7x
topology: tpu7x:2x2x1
jax: 0.10.0
libtpu: 0.0.40
codegen_flags: <defaults>
</compile_context>

<pallas_src>
import math
from functools import partial

import jax
import jax.numpy as jnp
import numpy as np
from jax.experimental import pallas as pl
from jax.experimental.pallas import tpu as pltpu


# ----------------------------- Pallas kernel --------------------------------
def vae_kernel(
    x_ref,                       # (TB, T, E)   batch-major input tile
    eps_ref,                     # (TB, L)      reparameterization noise
    w_ih_e_ref, b_e_ref,         # (E, H), (1, H)   encoder input proj (b_ih+b_hh folded)
    w_ih_d_ref, b_d_ref,         # (E, H), (1, H)   decoder input proj
    w_hh_e_ref, w_hh_d_ref,      # (H, H)           recurrent weights
    w_h2r_ref, b_h2r_ref,        # (H, 2L), (1, 2L) fused [mu | log_sigma]
    w_l2h_ref, b_l2h_ref,        # (L, H), (1, H)   latent2hidden
    w_o2v_ref, b_o2v_ref,        # (H, E), (1, E)   outputs2vocab
    logits_ref,                  # (TB, T*E)    lane-dense batch-major logits slab
    lat_ref,                     # (TB, 3L)     packed [mu | log_sigma | z]
    hdec_scr,                    # VMEM (T*TB, H)  decoder hidden-state staging
):
    TB, T, E = x_ref.shape
    H = w_hh_e_ref.shape[0]
    L = eps_ref.shape[1]
    mdt = w_hh_e_ref.dtype           # MXU operand dtype (f32 or bf16)

    # ---- hoisted, batched input projections (natural batch-major layout) ----
    x_flat = x_ref[...].reshape(TB * T, E)           # leading-dim merge, no relayout
    xm = x_flat.astype(mdt)
    xe = (jnp.dot(xm, w_ih_e_ref[...], preferred_element_type=jnp.float32)
          + b_e_ref[...]).reshape(TB, T, H)          # xe[b, t] = x[b, t] @ W_ih_e + b_e
    xd = (jnp.dot(xm, w_ih_d_ref[...], preferred_element_type=jnp.float32)
          + b_d_ref[...]).reshape(TB, T, H)

    w_hh_e = w_hh_e_ref[...]                         # hoisted weight reads
    w_hh_d = w_hh_d_ref[...]

    # ---- encoder RNN: h_t = tanh(xe_t + h_{t-1} @ W_hh), fully unrolled -----
    h = jnp.zeros((TB, H), jnp.float32)
    for t in range(T):
        h = jnp.tanh(
            xe[:, t, :]
            + jnp.dot(h.astype(mdt), w_hh_e, preferred_element_type=jnp.float32)
        )

    # ---- posterior q(z|x): fused [mu | log_sigma]; packed single output -----
    rep = (
        jnp.dot(h.astype(mdt), w_h2r_ref[...], preferred_element_type=jnp.float32)
        + b_h2r_ref[...]
    )                                                # (TB, 2L)
    mu = rep[:, :L]
    ls = rep[:, L:]
    z = mu + jnp.exp(ls) * eps_ref[...]              # reparameterized sample
    lat_ref[...] = jnp.concatenate([rep, z], axis=-1)   # one (TB, 3L) store / DMA

    # ---- decoder: h0 = latent2hidden(z); unrolled recurrence ----------------
    h = (
        jnp.dot(z.astype(mdt), w_l2h_ref[...], preferred_element_type=jnp.float32)
        + b_l2h_ref[...]
    )
    for t in range(T):
        h = jnp.tanh(
            xd[:, t, :]
            + jnp.dot(h.astype(mdt), w_hh_d, preferred_element_type=jnp.float32)
        )
        # aligned 2-D slab store (TB multiple of 8, static offset)
        hdec_scr[t * TB:(t + 1) * TB, :] = h.astype(hdec_scr.dtype)

    # ---- one batched output projection; place time-slices at lane offsets ---
    h_all = hdec_scr[...]                            # (T*TB, H), no reshape
    logits = (
        jnp.dot(h_all.astype(mdt), w_o2v_ref[...], preferred_element_type=jnp.float32)
        + b_o2v_ref[...]
    )                                                # (T*TB, E), time-major
    for t in range(T):
        logits_ref[:, t * E:(t + 1) * E] = (
            logits[t * TB:(t + 1) * TB, :].astype(logits_ref.dtype)
        )


# ----------------------------- wrapper ---------------------------------------
def _fixed_spec(shape):
    n = len(shape)
    return pl.BlockSpec(shape, lambda b, n=n: (0,) * n)


def _default_batch_tile(B):
    """>=2 tiles once B >= 16 (shards the 'parallel' axis across v7x's two TCs),
    tile rows capped at 256 and kept a multiple of 8 that divides B."""
    if B < 16 or B % 8:
        return B
    target = min(B // 2, 256)
    best = B
    for cand in range(8, target + 1, 8):
        if B % cand == 0:
            best = cand
    return best


def vae_forward(x_bte, eps, params, *, batch_tile=None, use_bf16_matmul=False):
    """x_bte: (B, T, E) float32, eps: (B, L) float32. Returns dict of outputs."""
    B, T, E = x_bte.shape
    L = eps.shape[-1]
    H = params["w_hh_e"].shape[0]
    TB = batch_tile or _default_batch_tile(B)
    assert B % TB == 0, "batch must be divisible by the batch tile"
    assert TB % 8 == 0, "batch tile must be a multiple of 8 (sublane constraint)"

    wdt = jnp.bfloat16 if use_bf16_matmul else jnp.float32
    cast = lambda w: w.astype(wdt)                   # weights only; biases stay f32

    # fuse [mu | log_sigma] projection once at trace time
    w_h2r = jnp.concatenate([params["w_mu"], params["w_ls"]], axis=1)      # (H, 2L)
    b_h2r = jnp.concatenate([params["b_mu"], params["b_ls"]], axis=1)      # (1, 2L)

    inputs = (
        x_bte, eps,
        cast(params["w_ih_e"]), params["b_e"],
        cast(params["w_ih_d"]), params["b_d"],
        cast(params["w_hh_e"]), cast(params["w_hh_d"]),
        cast(w_h2r), b_h2r,
        cast(params["w_l2h"]), params["b_l2h"],
        cast(params["w_o2v"]), params["b_o2v"],
    )

    # NOTE: at large H, add pipeline_mode=pl.Buffered(1) to these grid-invariant
    # weight specs to single-buffer them (v7x 64 MiB VMEM budget).
    in_specs = [
        pl.BlockSpec((TB, T, E), lambda b: (b, 0, 0)),   # x tile (batch-major)
        pl.BlockSpec((TB, L), lambda b: (b, 0)),         # eps tile
    ] + [_fixed_spec(a.shape) for a in inputs[2:]]       # weights replicated

    out_shapes = (
        jax.ShapeDtypeStruct((B, T * E), jnp.float32),   # lane-dense logits slab
        jax.ShapeDtypeStruct((B, 3 * L), jnp.float32),   # packed [mu | log_sigma | z]
    )
    out_specs = [
        pl.BlockSpec((TB, T * E), lambda b: (b, 0)),
        pl.BlockSpec((TB, 3 * L), lambda b: (b, 0)),
    ]

    grid_spec = pltpu.PrefetchScalarGridSpec(
        num_scalar_prefetch=0,
        grid=(B // TB,),
        in_specs=in_specs,
        out_specs=out_specs,
        scratch_shapes=[pltpu.VMEM((T * TB, H), wdt)],
    )

    logits_slab, lat = pl.pallas_call(
        vae_kernel,
        out_shape=out_shapes,
        grid_spec=grid_spec,
        compiler_params=pltpu.CompilerParams(
            dimension_semantics=("parallel",),           # batch tiles independent
            vmem_limit_bytes=32 * 1024 * 1024,           # explicit (v5e default is 16 MiB)
        ),
    )(*inputs)

    px_logits = logits_slab.reshape(B, T, E)             # free reshape, no HBM transpose
    mu = lat[:, :L]
    ls = lat[:, L:2 * L]
    z = lat[:, 2 * L:]
    prior_mu = jnp.zeros((B, L), jnp.float32)
    prior_log_sigma = jnp.zeros((B, L), jnp.float32)
    return {
        "px_logits": px_logits,
        "qz_mu": mu,
        "qz_log_sigma": ls,
        "z": z,
        "pz_mu": prior_mu,
        "pz_log_sigma": prior_log_sigma,
    }


# ----------------------------- pure-JAX reference ----------------------------
def vae_reference(x_bte, eps, params):
    B, T, E = x_bte.shape
    H = params["w_hh_e"].shape[0]
    h = jnp.zeros((B, H), jnp.float32)
    for t in range(T):
        h = jnp.tanh(x_bte[:, t] @ params["w_ih_e"] + h @ params["w_hh_e"] + params["b_e"])
    mu = h @ params["w_mu"] + params["b_mu"]
    ls = h @ params["w_ls"] + params["b_ls"]
    z = mu + jnp.exp(ls) * eps
    h = z @ params["w_l2h"] + params["b_l2h"]
    outs = []
    for t in range(T):
        h = jnp.tanh(x_bte[:, t] @ params["w_ih_d"] + h @ params["w_hh_d"] + params["b_d"])
        outs.append(h @ params["w_o2v"] + params["b_o2v"])
    return jnp.stack(outs, axis=1), mu, ls, z


# ----------------------------- parameter init --------------------------------
def init_params(key, E, H, L):
    """Deterministic init mimicking PyTorch defaults (U(-1/sqrt(fan), 1/sqrt(fan))).
    Weights are stored pre-transposed as (in, out); RNN biases b_ih + b_hh are fused."""
    ks = jax.random.split(key, 20)
    u = lambda k, shape, fan: jax.random.uniform(
        k, shape, jnp.float32, -1.0 / math.sqrt(fan), 1.0 / math.sqrt(fan)
    )
    p = {}
    # encoder RNN
    p["w_ih_e"] = u(ks[0], (E, H), H)
    p["w_hh_e"] = u(ks[1], (H, H), H)
    p["b_e"] = u(ks[2], (1, H), H) + u(ks[3], (1, H), H)      # b_ih + b_hh
    # hidden2rep: Linear(H, 2L), weight (2L, H) -> split & transpose
    w_h2r = u(ks[4], (2 * L, H), H)
    b_h2r = u(ks[5], (1, 2 * L), H)
    p["w_mu"] = w_h2r[:L].T
    p["w_ls"] = w_h2r[L:].T
    p["b_mu"] = b_h2r[:, :L]
    p["b_ls"] = b_h2r[:, L:]
    # latent2hidden: Linear(L, H)
    p["w_l2h"] = u(ks[6], (H, L), L).T
    p["b_l2h"] = u(ks[7], (1, H), L)
    # decoder RNN
    p["w_ih_d"] = u(ks[8], (E, H), H)
    p["w_hh_d"] = u(ks[9], (H, H), H)
    p["b_d"] = u(ks[10], (1, H), H) + u(ks[11], (1, H), H)
    # outputs2vocab: Linear(H, E)
    p["w_o2v"] = u(ks[12], (E, H), H).T
    p["b_o2v"] = u(ks[13], (1, E), H)
    return p


# ----------------------------- main -------------------------------------------
if __name__ == "__main__":
    B, T, E, H, L = 8, 8, 32, 32, 16      # batch, seq, embedding, hidden, latent
    key = jax.random.PRNGKey(0)
    k_x, k_eps, k_p = jax.random.split(key, 3)

    x = jax.random.normal(k_x, (B, T, E), jnp.float32)    # (batch, seq, embedding)
    eps = jax.random.normal(k_eps, (B, L), jnp.float32)   # reparameterization noise
    params = init_params(k_p, E, H, L)

    # f32 MXU-operand path (default): bit-for-bit comparable with the reference
    out = jax.jit(partial(vae_forward, params=params))(x, eps)
    out = jax.block_until_ready(out)

    ref_logits, ref_mu, ref_ls, ref_z = vae_reference(x, eps, params)
    np.testing.assert_allclose(np.asarray(out["px_logits"]), np.asarray(ref_logits),
                               rtol=2e-3, atol=2e-3)
    np.testing.assert_allclose(np.asarray(out["qz_mu"]), np.asarray(ref_mu),
                               rtol=2e-3, atol=2e-3)
    np.testing.assert_allclose(np.asarray(out["qz_log_sigma"]), np.asarray(ref_ls),
                               rtol=2e-3, atol=2e-3)
    np.testing.assert_allclose(np.asarray(out["z"]), np.asarray(ref_z),
                               rtol=2e-3, atol=2e-3)

    # bf16 MXU-operand path (v5e/v6e/v7x throughput lever) — looser tolerance
    out_bf16 = jax.jit(partial(vae_forward, params=params, use_bf16_matmul=True))(x, eps)
    out_bf16 = jax.block_until_ready(out_bf16)
    np.testing.assert_allclose(np.asarray(out_bf16["px_logits"]), np.asarray(ref_logits),
                               rtol=8e-2, atol=8e-2)

    print("KERNEL_OK")
</pallas_src>

<mosaic_0001>
module attributes {stable_mosaic.version = 11 : i64} {
  func.func @vae_kernel(%arg0: i32, %arg1: memref<8x8x32xf32, #tpu.memory_space<vmem>>, %arg2: memref<8x16xf32, #tpu.memory_space<vmem>>, %arg3: memref<32x32xf32, #tpu.memory_space<vmem>>, %arg4: memref<1x32xf32, #tpu.memory_space<vmem>>, %arg5: memref<32x32xf32, #tpu.memory_space<vmem>>, %arg6: memref<1x32xf32, #tpu.memory_space<vmem>>, %arg7: memref<32x32xf32, #tpu.memory_space<vmem>>, %arg8: memref<32x32xf32, #tpu.memory_space<vmem>>, %arg9: memref<32x32xf32, #tpu.memory_space<vmem>>, %arg10: memref<1x32xf32, #tpu.memory_space<vmem>>, %arg11: memref<16x32xf32, #tpu.memory_space<vmem>>, %arg12: memref<1x32xf32, #tpu.memory_space<vmem>>, %arg13: memref<32x32xf32, #tpu.memory_space<vmem>>, %arg14: memref<1x32xf32, #tpu.memory_space<vmem>>, %arg15: memref<8x256xf32, #tpu.memory_space<vmem>>, %arg16: memref<8x48xf32, #tpu.memory_space<vmem>>, %arg17: memref<64x32xf32, #tpu.memory_space<vmem>>) attributes {dimension_semantics = [#tpu.dimension_semantics<parallel>], iteration_bounds = array<i64: 1>, scalar_prefetch = 0 : i64, scratch_operands = 1 : i64, tpu.core_type = #tpu.core_type<tc>, window_params = [{transform_indices = @transform_0, window_bounds = array<i64: 8, 8, 32>}, {transform_indices = @transform_1, window_bounds = array<i64: 8, 16>}, {pipeline_mode = #tpu.pipeline_mode<synchronous>, transform_indices = @transform_2, window_bounds = array<i64: 32, 32>}, {pipeline_mode = #tpu.pipeline_mode<synchronous>, transform_indices = @transform_3, window_bounds = array<i64: 1, 32>}, {pipeline_mode = #tpu.pipeline_mode<synchronous>, transform_indices = @transform_4, window_bounds = array<i64: 32, 32>}, {pipeline_mode = #tpu.pipeline_mode<synchronous>, transform_indices = @transform_5, window_bounds = array<i64: 1, 32>}, {pipeline_mode = #tpu.pipeline_mode<synchronous>, transform_indices = @transform_6, window_bounds = array<i64: 32, 32>}, {pipeline_mode = #tpu.pipeline_mode<synchronous>, transform_indices = @transform_7, window_bounds = array<i64: 32, 32>}, {pipeline_mode = #tpu.pipeline_mode<synchronous>, transform_indices = @transform_8, window_bounds = array<i64: 32, 32>}, {pipeline_mode = #tpu.pipeline_mode<synchronous>, transform_indices = @transform_9, window_bounds = array<i64: 1, 32>}, {pipeline_mode = #tpu.pipeline_mode<synchronous>, transform_indices = @transform_10, window_bounds = array<i64: 16, 32>}, {pipeline_mode = #tpu.pipeline_mode<synchronous>, transform_indices = @transform_11, window_bounds = array<i64: 1, 32>}, {pipeline_mode = #tpu.pipeline_mode<synchronous>, transform_indices = @transform_12, window_bounds = array<i64: 32, 32>}, {pipeline_mode = #tpu.pipeline_mode<synchronous>, transform_indices = @transform_13, window_bounds = array<i64: 1, 32>}, {transform_indices = @transform_14, window_bounds = array<i64: 8, 256>}, {transform_indices = @transform_15, window_bounds = array<i64: 8, 48>}]} {
    %c0 = arith.constant 0 : index
    %c0_0 = arith.constant 0 : index
    %c0_1 = arith.constant 0 : index
    %0 = vector.load %arg1[%c0, %c0_0, %c0_1] : memref<8x8x32xf32, #tpu.memory_space<vmem>>, vector<8x8x32xf32>
    %1 = vector.shape_cast %0 : vector<8x8x32xf32> to vector<64x32xf32>
    %c0_2 = arith.constant 0 : index
    %c0_3 = arith.constant 0 : index
    %2 = vector.load %arg3[%c0_2, %c0_3] : memref<32x32xf32, #tpu.memory_space<vmem>>, vector<32x32xf32>
    %cst = arith.constant dense<0.000000e+00> : vector<64x32xf32>
    %3 = tpu.matmul %1, %2, %cst {dimension_numbers = #tpu.dot_dimension_numbers<[1], [0], [0], [1], [0, 0, 1, 1], [], []>} : vector<64x32xf32>, vector<32x32xf32>, vector<64x32xf32> -> vector<64x32xf32>
    %c0_4 = arith.constant 0 : index
    %c0_5 = arith.constant 0 : index
    %4 = vector.load %arg4[%c0_4, %c0_5] : memref<1x32xf32, #tpu.memory_space<vmem>>, vector<1x32xf32>
    %5 = vector.broadcast %4 : vector<1x32xf32> to vector<64x32xf32>
    %6 = arith.addf %3, %5 : vector<64x32xf32>
    %7 = vector.shape_cast %6 : vector<64x32xf32> to vector<8x8x32xf32>
    %c0_6 = arith.constant 0 : index
    %c0_7 = arith.constant 0 : index
    %8 = vector.load %arg5[%c0_6, %c0_7] : memref<32x32xf32, #tpu.memory_space<vmem>>, vector<32x32xf32>
    %cst_8 = arith.constant dense<0.000000e+00> : vector<64x32xf32>
    %9 = tpu.matmul %1, %8, %cst_8 {dimension_numbers = #tpu.dot_dimension_numbers<[1], [0], [0], [1], [0, 0, 1, 1], [], []>} : vector<64x32xf32>, vector<32x32xf32>, vector<64x32xf32> -> vector<64x32xf32>
    %c0_9 = arith.constant 0 : index
    %c0_10 = arith.constant 0 : index
    %10 = vector.load %arg6[%c0_9, %c0_10] : memref<1x32xf32, #tpu.memory_space<vmem>>, vector<1x32xf32>
    %11 = vector.broadcast %10 : vector<1x32xf32> to vector<64x32xf32>
    %12 = arith.addf %9, %11 : vector<64x32xf32>
    %13 = vector.shape_cast %12 : vector<64x32xf32> to vector<8x8x32xf32>
    %c0_11 = arith.constant 0 : index
    %c0_12 = arith.constant 0 : index
    %14 = vector.load %arg7[%c0_11, %c0_12] : memref<32x32xf32, #tpu.memory_space<vmem>>, vector<32x32xf32>
    %c0_13 = arith.constant 0 : index
    %c0_14 = arith.constant 0 : index
    %15 = vector.load %arg8[%c0_13, %c0_14] : memref<32x32xf32, #tpu.memory_space<vmem>>, vector<32x32xf32>
    %cst_15 = arith.constant 0.000000e+00 : f32
    %16 = vector.broadcast %cst_15 : f32 to vector<8x32xf32>
    %17 = vector.extract_strided_slice %7 {offsets = [0, 0, 0], sizes = [8, 1, 32], strides = [1, 1, 1]} : vector<8x8x32xf32> to vector<8x1x32xf32>
    %18 = vector.shape_cast %17 : vector<8x1x32xf32> to vector<8x32xf32>
    %cst_16 = arith.constant dense<0.000000e+00> : vector<8x32xf32>
    %19 = tpu.matmul %16, %14, %cst_16 {dimension_numbers = #tpu.dot_dimension_numbers<[1], [0], [0], [1], [0, 0, 1, 1], [], []>} : vector<8x32xf32>, vector<32x32xf32>, vector<8x32xf32> -> vector<8x32xf32>
    %20 = arith.addf %18, %19 : vector<8x32xf32>
    %21 = math.tanh %20 : vector<8x32xf32>
    %22 = vector.extract_strided_slice %7 {offsets = [0, 1, 0], sizes = [8, 1, 32], strides = [1, 1, 1]} : vector<8x8x32xf32> to vector<8x1x32xf32>
    %23 = vector.shape_cast %22 : vector<8x1x32xf32> to vector<8x32xf32>
    %cst_17 = arith.constant dense<0.000000e+00> : vector<8x32xf32>
    %24 = tpu.matmul %21, %14, %cst_17 {dimension_numbers = #tpu.dot_dimension_numbers<[1], [0], [0], [1], [0, 0, 1, 1], [], []>} : vector<8x32xf32>, vector<32x32xf32>, vector<8x32xf32> -> vector<8x32xf32>
    %25 = arith.addf %23, %24 : vector<8x32xf32>
    %26 = math.tanh %25 : vector<8x32xf32>
    %27 = vector.extract_strided_slice %7 {offsets = [0, 2, 0], sizes = [8, 1, 32], strides = [1, 1, 1]} : vector<8x8x32xf32> to vector<8x1x32xf32>
    %28 = vector.shape_cast %27 : vector<8x1x32xf32> to vector<8x32xf32>
    %cst_18 = arith.constant dense<0.000000e+00> : vector<8x32xf32>
    %29 = tpu.matmul %26, %14, %cst_18 {dimension_numbers = #tpu.dot_dimension_numbers<[1], [0], [0], [1], [0, 0, 1, 1], [], []>} : vector<8x32xf32>, vector<32x32xf32>, vector<8x32xf32> -> vector<8x32xf32>
    %30 = arith.addf %28, %29 : vector<8x32xf32>
    %31 = math.tanh %30 : vector<8x32xf32>
    %32 = vector.extract_strided_slice %7 {offsets = [0, 3, 0], sizes = [8, 1, 32], strides = [1, 1, 1]} : vector<8x8x32xf32> to vector<8x1x32xf32>
    %33 = vector.shape_cast %32 : vector<8x1x32xf32> to vector<8x32xf32>
    %cst_19 = arith.constant dense<0.000000e+00> : vector<8x32xf32>
    %34 = tpu.matmul %31, %14, %cst_19 {dimension_numbers = #tpu.dot_dimension_numbers<[1], [0], [0], [1], [0, 0, 1, 1], [], []>} : vector<8x32xf32>, vector<32x32xf32>, vector<8x32xf32> -> vector<8x32xf32>
    %35 = arith.addf %33, %34 : vector<8x32xf32>
    %36 = math.tanh %35 : vector<8x32xf32>
    %37 = vector.extract_strided_slice %7 {offsets = [0, 4, 0], sizes = [8, 1, 32], strides = [1, 1, 1]} : vector<8x8x32xf32> to vector<8x1x32xf32>
    %38 = vector.shape_cast %37 : vector<8x1x32xf32> to vector<8x32xf32>
    %cst_20 = arith.constant dense<0.000000e+00> : vector<8x32xf32>
    %39 = tpu.matmul %36, %14, %cst_20 {dimension_numbers = #tpu.dot_dimension_numbers<[1], [0], [0], [1], [0, 0, 1, 1], [], []>} : vector<8x32xf32>, vector<32x32xf32>, vector<8x32xf32> -> vector<8x32xf32>
    %40 = arith.addf %38, %39 : vector<8x32xf32>
    %41 = math.tanh %40 : vector<8x32xf32>
    %42 = vector.extract_strided_slice %7 {offsets = [0, 5, 0], sizes = [8, 1, 32], strides = [1, 1, 1]} : vector<8x8x32xf32> to vector<8x1x32xf32>
    %43 = vector.shape_cast %42 : vector<8x1x32xf32> to vector<8x32xf32>
    %cst_21 = arith.constant dense<0.000000e+00> : vector<8x32xf32>
    %44 = tpu.matmul %41, %14, %cst_21 {dimension_numbers = #tpu.dot_dimension_numbers<[1], [0], [0], [1], [0, 0, 1, 1], [], []>} : vector<8x32xf32>, vector<32x32xf32>, vector<8x32xf32> -> vector<8x32xf32>
    %45 = arith.addf %43, %44 : vector<8x32xf32>
    %46 = math.tanh %45 : vector<8x32xf32>
    %47 = vector.extract_strided_slice %7 {offsets = [0, 6, 0], sizes = [8, 1, 32], strides = [1, 1, 1]} : vector<8x8x32xf32> to vector<8x1x32xf32>
    %48 = vector.shape_cast %47 : vector<8x1x32xf32> to vector<8x32xf32>
    %cst_22 = arith.constant dense<0.000000e+00> : vector<8x32xf32>
    %49 = tpu.matmul %46, %14, %cst_22 {dimension_numbers = #tpu.dot_dimension_numbers<[1], [0], [0], [1], [0, 0, 1, 1], [], []>} : vector<8x32xf32>, vector<32x32xf32>, vector<8x32xf32> -> vector<8x32xf32>
    %50 = arith.addf %48, %49 : vector<8x32xf32>
    %51 = math.tanh %50 : vector<8x32xf32>
    %52 = vector.extract_strided_slice %7 {offsets = [0, 7, 0], sizes = [8, 1, 32], strides = [1, 1, 1]} : vector<8x8x32xf32> to vector<8x1x32xf32>
    %53 = vector.shape_cast %52 : vector<8x1x32xf32> to vector<8x32xf32>
    %cst_23 = arith.constant dense<0.000000e+00> : vector<8x32xf32>
    %54 = tpu.matmul %51, %14, %cst_23 {dimension_numbers = #tpu.dot_dimension_numbers<[1], [0], [0], [1], [0, 0, 1, 1], [], []>} : vector<8x32xf32>, vector<32x32xf32>, vector<8x32xf32> -> vector<8x32xf32>
    %55 = arith.addf %53, %54 : vector<8x32xf32>
    %56 = math.tanh %55 : vector<8x32xf32>
    %c0_24 = arith.constant 0 : index
    %c0_25 = arith.constant 0 : index
    %57 = vector.load %arg9[%c0_24, %c0_25] : memref<32x32xf32, #tpu.memory_space<vmem>>, vector<32x32xf32>
    %cst_26 = arith.constant dense<0.000000e+00> : vector<8x32xf32>
    %58 = tpu.matmul %56, %57, %cst_26 {dimension_numbers = #tpu.dot_dimension_numbers<[1], [0], [0], [1], [0, 0, 1, 1], [], []>} : vector<8x32xf32>, vector<32x32xf32>, vector<8x32xf32> -> vector<8x32xf32>
    %c0_27 = arith.constant 0 : index
    %c0_28 = arith.constant 0 : index
    %59 = vector.load %arg10[%c0_27, %c0_28] : memref<1x32xf32, #tpu.memory_space<vmem>>, vector<1x32xf32>
    %60 = vector.broadcast %59 : vector<1x32xf32> to vector<8x32xf32>
    %61 = arith.addf %58, %60 : vector<8x32xf32>
    %62 = vector.extract_strided_slice %61 {offsets = [0, 0], sizes = [8, 16], strides = [1, 1]} : vector<8x32xf32> to vector<8x16xf32>
    %63 = vector.extract_strided_slice %61 {offsets = [0, 16], sizes = [8, 16], strides = [1, 1]} : vector<8x32xf32> to vector<8x16xf32>
    %64 = math.exp %63 : vector<8x16xf32>
    %c0_29 = arith.constant 0 : index
    %c0_30 = arith.constant 0 : index
    %65 = vector.load %arg2[%c0_29, %c0_30] : memref<8x16xf32, #tpu.memory_space<vmem>>, vector<8x16xf32>
    %66 = arith.mulf %64, %65 : vector<8x16xf32>
    %67 = arith.addf %62, %66 : vector<8x16xf32>
    %68 = tpu.concatenate %61, %67 in 1 : vector<8x32xf32>, vector<8x16xf32> -> vector<8x48xf32>
    %c0_31 = arith.constant 0 : index
    %c0_32 = arith.constant 0 : index
    %69 = vector.load %arg16[%c0_31, %c0_32] : memref<8x48xf32, #tpu.memory_space<vmem>>, vector<8x48xf32>
    tpu.vector_store %arg16[%c0_31, %c0_32], %68 {strides = array<i32>} : memref<8x48xf32, #tpu.memory_space<vmem>>, vector<8x48xf32>,
    %c0_33 = arith.constant 0 : index
    %c0_34 = arith.constant 0 : index
    %70 = vector.load %arg11[%c0_33, %c0_34] : memref<16x32xf32, #tpu.memory_space<vmem>>, vector<16x32xf32>
    %cst_35 = arith.constant dense<0.000000e+00> : vector<8x32xf32>
    %71 = tpu.matmul %67, %70, %cst_35 {dimension_numbers = #tpu.dot_dimension_numbers<[1], [0], [0], [1], [0, 0, 1, 1], [], []>} : vector<8x16xf32>, vector<16x32xf32>, vector<8x32xf32> -> vector<8x32xf32>
    %c0_36 = arith.constant 0 : index
    %c0_37 = arith.constant 0 : index
    %72 = vector.load %arg12[%c0_36, %c0_37] : memref<1x32xf32, #tpu.memory_space<vmem>>, vector<1x32xf32>
    %73 = vector.broadcast %72 : vector<1x32xf32> to vector<8x32xf32>
    %74 = arith.addf %71, %73 : vector<8x32xf32>
    %75 = vector.extract_strided_slice %13 {offsets = [0, 0, 0], sizes = [8, 1, 32], strides = [1, 1, 1]} : vector<8x8x32xf32> to vector<8x1x32xf32>
    %76 = vector.shape_cast %75 : vector<8x1x32xf32> to vector<8x32xf32>
    %cst_38 = arith.constant dense<0.000000e+00> : vector<8x32xf32>
    %77 = tpu.matmul %74, %15, %cst_38 {dimension_numbers = #tpu.dot_dimension_numbers<[1], [0], [0], [1], [0, 0, 1, 1], [], []>} : vector<8x32xf32>, vector<32x32xf32>, vector<8x32xf32> -> vector<8x32xf32>
    %78 = arith.addf %76, %77 : vector<8x32xf32>
    %79 = math.tanh %78 : vector<8x32xf32>
    %c0_39 = arith.constant 0 : index
    %c0_40 = arith.constant 0 : index
    %80 = vector.load %arg17[%c0_39, %c0_40] : memref<64x32xf32, #tpu.memory_space<vmem>>, vector<8x32xf32>
    tpu.vector_store %arg17[%c0_39, %c0_40], %79 {strides = array<i32>} : memref<64x32xf32, #tpu.memory_space<vmem>>, vector<8x32xf32>,
    %81 = vector.extract_strided_slice %13 {offsets = [0, 1, 0], sizes = [8, 1, 32], strides = [1, 1, 1]} : vector<8x8x32xf32> to vector<8x1x32xf32>
    %82 = vector.shape_cast %81 : vector<8x1x32xf32> to vector<8x32xf32>
    %cst_41 = arith.constant dense<0.000000e+00> : vector<8x32xf32>
    %83 = tpu.matmul %79, %15, %cst_41 {dimension_numbers = #tpu.dot_dimension_numbers<[1], [0], [0], [1], [0, 0, 1, 1], [], []>} : vector<8x32xf32>, vector<32x32xf32>, vector<8x32xf32> -> vector<8x32xf32>
    %84 = arith.addf %82, %83 : vector<8x32xf32>
    %85 = math.tanh %84 : vector<8x32xf32>
    %c8 = arith.constant 8 : index
    %c0_42 = arith.constant 0 : index
    %86 = vector.load %arg17[%c8, %c0_42] : memref<64x32xf32, #tpu.memory_space<vmem>>, vector<8x32xf32>
    tpu.vector_store %arg17[%c8, %c0_42], %85 {strides = array<i32>} : memref<64x32xf32, #tpu.memory_space<vmem>>, vector<8x32xf32>,
    %87 = vector.extract_strided_slice %13 {offsets = [0, 2, 0], sizes = [8, 1, 32], strides = [1, 1, 1]} : vector<8x8x32xf32> to vector<8x1x32xf32>
    %88 = vector.shape_cast %87 : vector<8x1x32xf32> to vector<8x32xf32>
    %cst_43 = arith.constant dense<0.000000e+00> : vector<8x32xf32>
    %89 = tpu.matmul %85, %15, %cst_43 {dimension_numbers = #tpu.dot_dimension_numbers<[1], [0], [0], [1], [0, 0, 1, 1], [], []>} : vector<8x32xf32>, vector<32x32xf32>, vector<8x32xf32> -> vector<8x32xf32>
    %90 = arith.addf %88, %89 : vector<8x32xf32>
    %91 = math.tanh %90 : vector<8x32xf32>
    %c16 = arith.constant 16 : index
    %c0_44 = arith.constant 0 : index
    %92 = vector.load %arg17[%c16, %c0_44] : memref<64x32xf32, #tpu.memory_space<vmem>>, vector<8x32xf32>
    tpu.vector_store %arg17[%c16, %c0_44], %91 {strides = array<i32>} : memref<64x32xf32, #tpu.memory_space<vmem>>, vector<8x32xf32>,
    %93 = vector.extract_strided_slice %13 {offsets = [0, 3, 0], sizes = [8, 1, 32], strides = [1, 1, 1]} : vector<8x8x32xf32> to vector<8x1x32xf32>
    %94 = vector.shape_cast %93 : vector<8x1x32xf32> to vector<8x32xf32>
    %cst_45 = arith.constant dense<0.000000e+00> : vector<8x32xf32>
    %95 = tpu.matmul %91, %15, %cst_45 {dimension_numbers = #tpu.dot_dimension_numbers<[1], [0], [0], [1], [0, 0, 1, 1], [], []>} : vector<8x32xf32>, vector<32x32xf32>, vector<8x32xf32> -> vector<8x32xf32>
    %96 = arith.addf %94, %95 : vector<8x32xf32>
    %97 = math.tanh %96 : vector<8x32xf32>
    %c24 = arith.constant 24 : index
    %c0_46 = arith.constant 0 : index
    %98 = vector.load %arg17[%c24, %c0_46] : memref<64x32xf32, #tpu.memory_space<vmem>>, vector<8x32xf32>
    tpu.vector_store %arg17[%c24, %c0_46], %97 {strides = array<i32>} : memref<64x32xf32, #tpu.memory_space<vmem>>, vector<8x32xf32>,
    %99 = vector.extract_strided_slice %13 {offsets = [0, 4, 0], sizes = [8, 1, 32], strides = [1, 1, 1]} : vector<8x8x32xf32> to vector<8x1x32xf32>
    %100 = vector.shape_cast %99 : vector<8x1x32xf32> to vector<8x32xf32>
    %cst_47 = arith.constant dense<0.000000e+00> : vector<8x32xf32>
    %101 = tpu.matmul %97, %15, %cst_47 {dimension_numbers = #tpu.dot_dimension_numbers<[1], [0], [0], [1], [0, 0, 1, 1], [], []>} : vector<8x32xf32>, vector<32x32xf32>, vector<8x32xf32> -> vector<8x32xf32>
    %102 = arith.addf %100, %101 : vector<8x32xf32>
    %103 = math.tanh %102 : vector<8x32xf32>
    %c32 = arith.constant 32 : index
    %c0_48 = arith.constant 0 : index
    %104 = vector.load %arg17[%c32, %c0_48] : memref<64x32xf32, #tpu.memory_space<vmem>>, vector<8x32xf32>
    tpu.vector_store %arg17[%c32, %c0_48], %103 {strides = array<i32>} : memref<64x32xf32, #tpu.memory_space<vmem>>, vector<8x32xf32>,
    %105 = vector.extract_strided_slice %13 {offsets = [0, 5, 0], sizes = [8, 1, 32], strides = [1, 1, 1]} : vector<8x8x32xf32> to vector<8x1x32xf32>
    %106 = vector.shape_cast %105 : vector<8x1x32xf32> to vector<8x32xf32>
    %cst_49 = arith.constant dense<0.000000e+00> : vector<8x32xf32>
    %107 = tpu.matmul %103, %15, %cst_49 {dimension_numbers = #tpu.dot_dimension_numbers<[1], [0], [0], [1], [0, 0, 1, 1], [], []>} : vector<8x32xf32>, vector<32x32xf32>, vector<8x32xf32> -> vector<8x32xf32>
    %108 = arith.addf %106, %107 : vector<8x32xf32>
    %109 = math.tanh %108 : vector<8x32xf32>
    %c40 = arith.constant 40 : index
    %c0_50 = arith.constant 0 : index
    %110 = vector.load %arg17[%c40, %c0_50] : memref<64x32xf32, #tpu.memory_space<vmem>>, vector<8x32xf32>
    tpu.vector_store %arg17[%c40, %c0_50], %109 {strides = array<i32>} : memref<64x32xf32, #tpu.memory_space<vmem>>, vector<8x32xf32>,
    %111 = vector.extract_strided_slice %13 {offsets = [0, 6, 0], sizes = [8, 1, 32], strides = [1, 1, 1]} : vector<8x8x32xf32> to vector<8x1x32xf32>
    %112 = vector.shape_cast %111 : vector<8x1x32xf32> to vector<8x32xf32>
    %cst_51 = arith.constant dense<0.000000e+00> : vector<8x32xf32>
    %113 = tpu.matmul %109, %15, %cst_51 {dimension_numbers = #tpu.dot_dimension_numbers<[1], [0], [0], [1], [0, 0, 1, 1], [], []>} : vector<8x32xf32>, vector<32x32xf32>, vector<8x32xf32> -> vector<8x32xf32>
    %114 = arith.addf %112, %113 : vector<8x32xf32>
    %115 = math.tanh %114 : vector<8x32xf32>
    %c48 = arith.constant 48 : index
    %c0_52 = arith.constant 0 : index
    %116 = vector.load %arg17[%c48, %c0_52] : memref<64x32xf32, #tpu.memory_space<vmem>>, vector<8x32xf32>
    tpu.vector_store %arg17[%c48, %c0_52], %115 {strides = array<i32>} : memref<64x32xf32, #tpu.memory_space<vmem>>, vector<8x32xf32>,
    %117 = vector.extract_strided_slice %13 {offsets = [0, 7, 0], sizes = [8, 1, 32], strides = [1, 1, 1]} : vector<8x8x32xf32> to vector<8x1x32xf32>
    %118 = vector.shape_cast %117 : vector<8x1x32xf32> to vector<8x32xf32>
    %cst_53 = arith.constant dense<0.000000e+00> : vector<8x32xf32>
    %119 = tpu.matmul %115, %15, %cst_53 {dimension_numbers = #tpu.dot_dimension_numbers<[1], [0], [0], [1], [0, 0, 1, 1], [], []>} : vector<8x32xf32>, vector<32x32xf32>, vector<8x32xf32> -> vector<8x32xf32>
    %120 = arith.addf %118, %119 : vector<8x32xf32>
    %121 = math.tanh %120 : vector<8x32xf32>
    %c56 = arith.constant 56 : index
    %c0_54 = arith.constant 0 : index
    %122 = vector.load %arg17[%c56, %c0_54] : memref<64x32xf32, #tpu.memory_space<vmem>>, vector<8x32xf32>
    tpu.vector_store %arg17[%c56, %c0_54], %121 {strides = array<i32>} : memref<64x32xf32, #tpu.memory_space<vmem>>, vector<8x32xf32>,
    %c0_55 = arith.constant 0 : index
    %c0_56 = arith.constant 0 : index
    %123 = vector.load %arg17[%c0_55, %c0_56] : memref<64x32xf32, #tpu.memory_space<vmem>>, vector<64x32xf32>
    %c0_57 = arith.constant 0 : index
    %c0_58 = arith.constant 0 : index
    %124 = vector.load %arg13[%c0_57, %c0_58] : memref<32x32xf32, #tpu.memory_space<vmem>>, vector<32x32xf32>
    %cst_59 = arith.constant dense<0.000000e+00> : vector<64x32xf32>
    %125 = tpu.matmul %123, %124, %cst_59 {dimension_numbers = #tpu.dot_dimension_numbers<[1], [0], [0], [1], [0, 0, 1, 1], [], []>} : vector<64x32xf32>, vector<32x32xf32>, vector<64x32xf32> -> vector<64x32xf32>
    %c0_60 = arith.constant 0 : index
    %c0_61 = arith.constant 0 : index
    %126 = vector.load %arg14[%c0_60, %c0_61] : memref<1x32xf32, #tpu.memory_space<vmem>>, vector<1x32xf32>
    %127 = vector.broadcast %126 : vector<1x32xf32> to vector<64x32xf32>
    %128 = arith.addf %125, %127 : vector<64x32xf32>
    %129 = vector.extract_strided_slice %128 {offsets = [0, 0], sizes = [8, 32], strides = [1, 1]} : vector<64x32xf32> to vector<8x32xf32>
    %c0_62 = arith.constant 0 : index
    %c0_63 = arith.constant 0 : index
    %130 = vector.load %arg15[%c0_62, %c0_63] : memref<8x256xf32, #tpu.memory_space<vmem>>, vector<8x32xf32>
    tpu.vector_store %arg15[%c0_62, %c0_63], %129 {strides = array<i32>} : memref<8x256xf32, #tpu.memory_space<vmem>>, vector<8x32xf32>,
    %131 = vector.extract_strided_slice %128 {offsets = [8, 0], sizes = [8, 32], strides = [1, 1]} : vector<64x32xf32> to vector<8x32xf32>
    %c0_64 = arith.constant 0 : index
    %c32_65 = arith.constant 32 : index
    %132 = vector.load %arg15[%c0_64, %c32_65] : memref<8x256xf32, #tpu.memory_space<vmem>>, vector<8x32xf32>
    tpu.vector_store %arg15[%c0_64, %c32_65], %131 {strides = array<i32>} : memref<8x256xf32, #tpu.memory_space<vmem>>, vector<8x32xf32>,
    %133 = vector.extract_strided_slice %128 {offsets = [16, 0], sizes = [8, 32], strides = [1, 1]} : vector<64x32xf32> to vector<8x32xf32>
    %c0_66 = arith.constant 0 : index
    %c64 = arith.constant 64 : index
    %134 = vector.load %arg15[%c0_66, %c64] : memref<8x256xf32, #tpu.memory_space<vmem>>, vector<8x32xf32>
    tpu.vector_store %arg15[%c0_66, %c64], %133 {strides = array<i32>} : memref<8x256xf32, #tpu.memory_space<vmem>>, vector<8x32xf32>,
    %135 = vector.extract_strided_slice %128 {offsets = [24, 0], sizes = [8, 32], strides = [1, 1]} : vector<64x32xf32> to vector<8x32xf32>
    %c0_67 = arith.constant 0 : index
    %c96 = arith.constant 96 : index
    %136 = vector.load %arg15[%c0_67, %c96] : memref<8x256xf32, #tpu.memory_space<vmem>>, vector<8x32xf32>
    tpu.vector_store %arg15[%c0_67, %c96], %135 {strides = array<i32>} : memref<8x256xf32, #tpu.memory_space<vmem>>, vector<8x32xf32>,
    %137 = vector.extract_strided_slice %128 {offsets = [32, 0], sizes = [8, 32], strides = [1, 1]} : vector<64x32xf32> to vector<8x32xf32>
    %c0_68 = arith.constant 0 : index
    %c128 = arith.constant 128 : index
    %138 = vector.load %arg15[%c0_68, %c128] : memref<8x256xf32, #tpu.memory_space<vmem>>, vector<8x32xf32>
    tpu.vector_store %arg15[%c0_68, %c128], %137 {strides = array<i32>} : memref<8x256xf32, #tpu.memory_space<vmem>>, vector<8x32xf32>,
    %139 = vector.extract_strided_slice %128 {offsets = [40, 0], sizes = [8, 32], strides = [1, 1]} : vector<64x32xf32> to vector<8x32xf32>
    %c0_69 = arith.constant 0 : index
    %c160 = arith.constant 160 : index
    %140 = vector.load %arg15[%c0_69, %c160] : memref<8x256xf32, #tpu.memory_space<vmem>>, vector<8x32xf32>
    tpu.vector_store %arg15[%c0_69, %c160], %139 {strides = array<i32>} : memref<8x256xf32, #tpu.memory_space<vmem>>, vector<8x32xf32>,
    %141 = vector.extract_strided_slice %128 {offsets = [48, 0], sizes = [8, 32], strides = [1, 1]} : vector<64x32xf32> to vector<8x32xf32>
    %c0_70 = arith.constant 0 : index
    %c192 = arith.constant 192 : index
    %142 = vector.load %arg15[%c0_70, %c192] : memref<8x256xf32, #tpu.memory_space<vmem>>, vector<8x32xf32>
    tpu.vector_store %arg15[%c0_70, %c192], %141 {strides = array<i32>} : memref<8x256xf32, #tpu.memory_space<vmem>>, vector<8x32xf32>,
    %143 = vector.extract_strided_slice %128 {offsets = [56, 0], sizes = [8, 32], strides = [1, 1]} : vector<64x32xf32> to vector<8x32xf32>
    %c0_71 = arith.constant 0 : index
    %c224 = arith.constant 224 : index
    %144 = vector.load %arg15[%c0_71, %c224] : memref<8x256xf32, #tpu.memory_space<vmem>>, vector<8x32xf32>
    tpu.vector_store %arg15[%c0_71, %c224], %143 {strides = array<i32>} : memref<8x256xf32, #tpu.memory_space<vmem>>, vector<8x32xf32>,
    return
  }
  func.func @transform_0(%arg0: i32) -> (i32, i32, i32) {
    %c0_i32 = arith.constant 0 : i32
    %c0_i32_0 = arith.constant 0 : i32
    %c0_i32_1 = arith.constant 0 : i32
    return %arg0, %c0_i32, %c0_i32_0 : i32, i32, i32
  }
  func.func @transform_1(%arg0: i32) -> (i32, i32) {
    %c0_i32 = arith.constant 0 : i32
    %c0_i32_0 = arith.constant 0 : i32
    return %arg0, %c0_i32 : i32, i32
  }
  func.func @transform_2(%arg0: i32) -> (i32, i32) {
    %c0_i32 = arith.constant 0 : i32
    %c0_i32_0 = arith.constant 0 : i32
    %c0_i32_1 = arith.constant 0 : i32
    return %c0_i32, %c0_i32_0 : i32, i32
  }
  func.func @transform_3(%arg0: i32) -> (i32, i32) {
    %c0_i32 = arith.constant 0 : i32
    %c0_i32_0 = arith.constant 0 : i32
    %c0_i32_1 = arith.constant 0 : i32
    return %c0_i32, %c0_i32_0 : i32, i32
  }
  func.func @transform_4(%arg0: i32) -> (i32, i32) {
    %c0_i32 = arith.constant 0 : i32
    %c0_i32_0 = arith.constant 0 : i32
    %c0_i32_1 = arith.constant 0 : i32
    return %c0_i32, %c0_i32_0 : i32, i32
  }
  func.func @transform_5(%arg0: i32) -> (i32, i32) {
    %c0_i32 = arith.constant 0 : i32
    %c0_i32_0 = arith.constant 0 : i32
    %c0_i32_1 = arith.constant 0 : i32
    return %c0_i32, %c0_i32_0 : i32, i32
  }
  func.func @transform_6(%arg0: i32) -> (i32, i32) {
    %c0_i32 = arith.constant 0 : i32
    %c0_i32_0 = arith.constant 0 : i32
    %c0_i32_1 = arith.constant 0 : i32
    return %c0_i32, %c0_i32_0 : i32, i32
  }
  func.func @transform_7(%arg0: i32) -> (i32, i32) {
    %c0_i32 = arith.constant 0 : i32
    %c0_i32_0 = arith.constant 0 : i32
    %c0_i32_1 = arith.constant 0 : i32
    return %c0_i32, %c0_i32_0 : i32, i32
  }
  func.func @transform_8(%arg0: i32) -> (i32, i32) {
    %c0_i32 = arith.constant 0 : i32
    %c0_i32_0 = arith.constant 0 : i32
    %c0_i32_1 = arith.constant 0 : i32
    return %c0_i32, %c0_i32_0 : i32, i32
  }
  func.func @transform_9(%arg0: i32) -> (i32, i32) {
    %c0_i32 = arith.constant 0 : i32
    %c0_i32_0 = arith.constant 0 : i32
    %c0_i32_1 = arith.constant 0 : i32
    return %c0_i32, %c0_i32_0 : i32, i32
  }
  func.func @transform_10(%arg0: i32) -> (i32, i32) {
    %c0_i32 = arith.constant 0 : i32
    %c0_i32_0 = arith.constant 0 : i32
    %c0_i32_1 = arith.constant 0 : i32
    return %c0_i32, %c0_i32_0 : i32, i32
  }
  func.func @transform_11(%arg0: i32) -> (i32, i32) {
    %c0_i32 = arith.constant 0 : i32
    %c0_i32_0 = arith.constant 0 : i32
    %c0_i32_1 = arith.constant 0 : i32
    return %c0_i32, %c0_i32_0 : i32, i32
  }
  func.func @transform_12(%arg0: i32) -> (i32, i32) {
    %c0_i32 = arith.constant 0 : i32
    %c0_i32_0 = arith.constant 0 : i32
    %c0_i32_1 = arith.constant 0 : i32
    return %c0_i32, %c0_i32_0 : i32, i32
  }
  func.func @transform_13(%arg0: i32) -> (i32, i32) {
    %c0_i32 = arith.constant 0 : i32
    %c0_i32_0 = arith.constant 0 : i32
    %c0_i32_1 = arith.constant 0 : i32
    return %c0_i32, %c0_i32_0 : i32, i32
  }
  func.func @transform_14(%arg0: i32) -> (i32, i32) {
    %c0_i32 = arith.constant 0 : i32
    %c0_i32_0 = arith.constant 0 : i32
    return %arg0, %c0_i32 : i32, i32
  }
  func.func @transform_15(%arg0: i32) -> (i32, i32) {
    %c0_i32 = arith.constant 0 : i32
    %c0_i32_0 = arith.constant 0 : i32
    return %arg0, %c0_i32 : i32, i32
  }
}

</mosaic_0001>

<bundles_post_ra>
// kernel: vae_forward.1
= control target key start
LH: loop header
LB: loop body
LE: loop exit
PB: predicated region body
PF: predicated region fallthrough
CT: control target
= control target key end

     0   :  { %21 = vsyncpa [#allocation4], 0  ;;  %s4718_s0 = inlined_call_operand.hbm [shape: f32[8,8,32], index: 0, kind: input, shape index: {}]   ;;  %s4719_s1 = inlined_call_operand.hbm [shape: f32[8,16], index: 1, kind: input, shape index: {}]   ;;  %s4720_s2 = inlined_call_operand.vmem [shape: f32[32,32], index: 2, kind: input, shape index: {}]   ;;  %s4721_s3 = inlined_call_operand.vmem [shape: f32[1,32], index: 3, kind: input, shape index: {}]   ;;  %s4722_s4 = inlined_call_operand.hbm [shape: f32[32,32], index: 4, kind: input, shape index: {}]   ;;  %s4723_s5 = inlined_call_operand.vmem [shape: f32[1,32], index: 5, kind: input, shape index: {}]   ;;  %s4724_s6 = inlined_call_operand.hbm [shape: f32[32,32], index: 6, kind: input, shape index: {}]   ;;  %s4725_s7 = inlined_call_operand.hbm [shape: f32[32,32], index: 7, kind: input, shape index: {}]   ;;  %s4726_s8 = inlined_call_operand.hbm [shape: f32[32,32], index: 8, kind: input, shape index: {}]   ;;  %s4727_s9 = inlined_call_operand.vmem [shape: f32[1,32], index: 9, kind: input, shape index: {}]   ;;  %s4728_s10 = inlined_call_operand.vmem [shape: f32[16,32], index: 10, kind: input, shape index: {}]   ;;  %s4729_s11 = inlined_call_operand.vmem [shape: f32[1,32], index: 11, kind: input, shape index: {}]   ;;  %s4730_s12 = inlined_call_operand.hbm [shape: f32[32,32], index: 12, kind: input, shape index: {}]   ;;  %s4731_s13 = inlined_call_operand.vmem [shape: f32[1,32], index: 13, kind: input, shape index: {}]   ;;  %s4732_s14 = inlined_call_operand.vmem [shape: f32[8,256], index: 14, kind: output, shape index: {0}]   ;;  %s4733_s15 = inlined_call_operand.vmem [shape: f32[8,48], index: 15, kind: output, shape index: {1}]  }
   0x1   :  { %22 = vsyncpa [#allocation6], 0 }
   0x2   :  { %23 = vsyncpa [#allocation9], 0 }
   0x3   :  { %24 = vsyncpa [#allocation12], 0  ;;  %s3935_s18 = smov [#allocation5]   ;;  %s3773_s22 = scalar_lea.hbm %s4719_s1, 128 }
   0x4   :  { %s43_s19 = sshll.u32 %s3935_s18, 4  ;;  %p3774_p0 = scmp.ne.s32.totalorder %s4719_s1, %s3773_s22  ;;  %s44_s19 = int_to_ptr.vmem [resolvable:$true] %s43_s19 }
   0x5   :  { %p3777_p1 = scmp.lt.u32.totalorder %s3773_s22, %s4719_s1 }
   0x7   :  { %p3779_p2 = pnand %p3777_p1, %p3774_p0 }
   0x9   :  { %3782 = shalt.err (!%p3779_p2)
}
   0xa   :  { %s3783_s27 = scalar_lea.vmem %s44_s19, 128  ;;  %p3788_p4 = scmp.lt.s32.totalorder %s44_s19, %s44_s19 }
   0xb   :  { %p3784_p3 = scmp.ne.s32.totalorder %s44_s19, %s3783_s27  ;;  %p3789_p5 = scmp.lt.s32.totalorder %s3783_s27, %s3783_s27 }
   0xd   :  { %p3790_p6 = por %p3789_p5, %p3788_p4 }
   0xf   :  { %p3791_p7 = pnand %p3790_p6, %p3784_p3 }
  0x11   :  { %3794 = shalt.err (!%p3791_p7)
}
  0x12   :  { %46 = dma.hbm_to_vmem [thread:$0]  %s4719_s1, 128, %s44_s19, [#allocation6]  }
  0x13   :  { %s3936_s30 = smov [#allocation8]   ;;  %s3937_s17 = smov [#allocation11]  }
  0x14   :  { %s70_s16 = sshll.u32 %s3936_s30, 4  ;;  %s94_s18 = sshll.u32 %s3937_s17, 4  ;;  %s71_s16 = int_to_ptr.vmem [resolvable:$true] %s70_s16  ;;  %s95_s18 = int_to_ptr.vmem [resolvable:$true] %s94_s18 }
  0x15   :  { %s3795_s22 = scalar_lea.hbm %s4724_s6, 512 }
  0x16   :  { %p3796_p8 = scmp.ne.s32.totalorder %s4724_s6, %s3795_s22  ;;  %p3799_p9 = scmp.lt.u32.totalorder %s3795_s22, %s4724_s6 }
  0x18   :  { %p3801_p10 = pnand %p3799_p9, %p3796_p8 }
  0x1a   :  { %3804 = shalt.err (!%p3801_p10)
}
  0x1b   :  { %s3805_s1 = scalar_lea.vmem %s71_s16, 512  ;;  %p3810_p12 = scmp.lt.s32.totalorder %s71_s16, %s71_s16 }
  0x1c   :  { %p3806_p11 = scmp.ne.s32.totalorder %s71_s16, %s3805_s1  ;;  %p3811_p13 = scmp.lt.s32.totalorder %s3805_s1, %s3805_s1 }
  0x1e   :  { %p3812_p0 = por %p3811_p13, %p3810_p12 }
  0x20   :  { %p3813_p1 = pnand %p3812_p0, %p3806_p11 }
  0x22   :  { %3816 = shalt.err (!%p3813_p1)
}
  0x23   :  { %s3938_s19 = smov 128   ;;  %s3939_s27 = smov 8  }
  0x24   :  { %76 = dma.hbm_to_vmem [thread:$0]  %s4724_s6, 512, %s71_s16, [#allocation9], %s3938_s19, %s3938_s19, %s3939_s27  }
  0x25   :  { %s3817_s20 = scalar_lea.hbm %s4726_s8, 512 }
  0x26   :  { %p3818_p2 = scmp.ne.s32.totalorder %s4726_s8, %s3817_s20  ;;  %p3821_p3 = scmp.lt.u32.totalorder %s3817_s20, %s4726_s8 }
  0x28   :  { %p3823_p4 = pnand %p3821_p3, %p3818_p2 }
  0x2a   :  { %3826 = shalt.err (!%p3823_p4)
}
  0x2b   :  { %s3827_s25 = scalar_lea.vmem %s95_s18, 512  ;;  %p3832_p6 = scmp.lt.s32.totalorder %s95_s18, %s95_s18 }
  0x2c   :  { %p3828_p5 = scmp.ne.s32.totalorder %s95_s18, %s3827_s25  ;;  %p3833_p7 = scmp.lt.s32.totalorder %s3827_s25, %s3827_s25 }
  0x2e   :  { %p3834_p8 = por %p3833_p7, %p3832_p6 }
  0x30   :  { %p3835_p9 = pnand %p3834_p8, %p3828_p5 }
  0x32   :  { %3838 = shalt.err (!%p3835_p9)
}
  0x33   :  { %100 = dma.hbm_to_vmem [thread:$0]  %s4726_s8, 512, %s95_s18, [#allocation12], %s3938_s19, %s3938_s19, %s3939_s27  }
  0x34   :  { %s3940_s26 = smov [#allocation3]   ;;  %s3941_s28 = smov [#allocation7]  }
  0x35   :  { %s30_s1 = sshll.u32 %s3940_s26, 4  ;;  %s56_s29 = sshll.u32 %s3941_s28, 4  ;;  %s31_s1 = int_to_ptr.vmem [resolvable:$true] %s30_s1  ;;  %s57_s29 = int_to_ptr.vmem [resolvable:$true] %s56_s29 }
  0x36   :  { %s3839_s20 = scalar_lea.hbm %s4718_s0, 1024 }
  0x37   :  { %p3840_p10 = scmp.ne.s32.totalorder %s4718_s0, %s3839_s20  ;;  %p3843_p11 = scmp.lt.u32.totalorder %s3839_s20, %s4718_s0 }
  0x39   :  { %p3845_p12 = pnand %p3843_p11, %p3840_p10 }
  0x3b   :  { %3848 = shalt.err (!%p3845_p12)
}
  0x3c   :  { %s3849_s8 = scalar_lea.vmem %s31_s1, 1024  ;;  %p3854_p0 = scmp.lt.s32.totalorder %s31_s1, %s31_s1 }
  0x3d   :  { %p3850_p13 = scmp.ne.s32.totalorder %s31_s1, %s3849_s8  ;;  %p3855_p1 = scmp.lt.s32.totalorder %s3849_s8, %s3849_s8 }
  0x3f   :  { %p3856_p2 = por %p3855_p1, %p3854_p0 }
  0x41   :  { %p3857_p3 = pnand %p3856_p2, %p3850_p13 }
  0x43   :  { %3860 = shalt.err (!%p3857_p3)
}
  0x44   :  { %36 = dma.hbm_to_vmem [thread:$0]  %s4718_s0, 1024, %s31_s1, [#allocation4], %s3938_s19, %s3938_s19, %s3939_s27  }
  0x45   :  { %s3861_s26 = scalar_lea.hbm %s4722_s4, 512 }
  0x46   :  { %p3862_p4 = scmp.ne.s32.totalorder %s4722_s4, %s3861_s26  ;;  %p3865_p5 = scmp.lt.u32.totalorder %s3861_s26, %s4722_s4 }
  0x48   :  { %p3867_p6 = pnand %p3865_p5, %p3862_p4 }
  0x4a   :  { %3870 = shalt.err (!%p3867_p6)
}
  0x4b   :  { %s3871_s21 = scalar_lea.vmem %s57_s29, 512  ;;  %p3876_p8 = scmp.lt.s32.totalorder %s57_s29, %s57_s29 }
  0x4c   :  { %p3872_p7 = scmp.ne.s32.totalorder %s57_s29, %s3871_s21  ;;  %p3877_p9 = scmp.lt.s32.totalorder %s3871_s21, %s3871_s21 }
  0x4e   :  { %p3878_p10 = por %p3877_p9, %p3876_p8 }
  0x50   :  { %p3879_p11 = pnand %p3878_p10, %p3872_p7 }
  0x52   :  { %3882 = shalt.err (!%p3879_p11)
}
  0x53   :  { %62 = dma.hbm_to_vmem [thread:$0]  %s4722_s4, 512, %s57_s29, [#allocation6], %s3938_s19, %s3938_s19, %s3939_s27  }
  0x54   :  { %s3942_s22 = smov [#allocation10]   ;;  %s3943_s24 = smov [#allocation13]  }
  0x55   :  { %s82_s23 = sshll.u32 %s3942_s22, 4  ;;  %s112_s8 = sshll.u32 %s3943_s24, 4  ;;  %s83_s23 = int_to_ptr.vmem [resolvable:$true] %s82_s23  ;;  %s113_s8 = int_to_ptr.vmem [resolvable:$true] %s112_s8 }
  0x56   :  { %s3883_s6 = scalar_lea.hbm %s4725_s7, 512 }
  0x57   :  { %p3884_p12 = scmp.ne.s32.totalorder %s4725_s7, %s3883_s6  ;;  %p3887_p13 = scmp.lt.u32.totalorder %s3883_s6, %s4725_s7 }
  0x59   :  { %p3889_p0 = pnand %p3887_p13, %p3884_p12 }
  0x5b   :  { %3892 = shalt.err (!%p3889_p0)
}
  0x5c   :  { %s3893_s4 = scalar_lea.vmem %s83_s23, 512  ;;  %p3898_p2 = scmp.lt.s32.totalorder %s83_s23, %s83_s23 }
  0x5d   :  { %p3894_p1 = scmp.ne.s32.totalorder %s83_s23, %s3893_s4  ;;  %p3899_p3 = scmp.lt.s32.totalorder %s3893_s4, %s3893_s4 }
  0x5f   :  { %p3900_p4 = por %p3899_p3, %p3898_p2 }
  0x61   :  { %p3901_p5 = pnand %p3900_p4, %p3894_p1 }
  0x63   :  { %3904 = shalt.err (!%p3901_p5)
}
  0x64   :  { %88 = dma.hbm_to_vmem [thread:$0]  %s4725_s7, 512, %s83_s23, [#allocation9], %s3938_s19, %s3938_s19, %s3939_s27  }
  0x65   :  { %s3905_s0 = scalar_lea.hbm %s4730_s12, 512 }
  0x66   :  { %p3906_p6 = scmp.ne.s32.totalorder %s4730_s12, %s3905_s0  ;;  %p3909_p7 = scmp.lt.u32.totalorder %s3905_s0, %s4730_s12 }
  0x68   :  { %p3911_p8 = pnand %p3909_p7, %p3906_p6 }
  0x6a   :  { %3914 = shalt.err (!%p3911_p8)
}
  0x6b   :  { %s3915_s25 = scalar_lea.vmem %s113_s8, 512  ;;  %p3920_p10 = scmp.lt.s32.totalorder %s113_s8, %s113_s8 }
  0x6c   :  { %p3916_p9 = scmp.ne.s32.totalorder %s113_s8, %s3915_s25  ;;  %p3921_p11 = scmp.lt.s32.totalorder %s3915_s25, %s3915_s25 }
  0x6e   :  { %p3922_p12 = por %p3921_p11, %p3920_p10 }
  0x70   :  { %p3923_p13 = pnand %p3922_p12, %p3916_p9 }
  0x72   :  { %3926 = shalt.err (!%p3923_p13)
}
  0x73   :  { %118 = dma.hbm_to_vmem [thread:$0]  %s4730_s12, 512, %s113_s8, [#allocation12], %s3938_s19, %s3938_s19, %s3939_s27  }
  0x74   :  { %3927 = dma.done.wait [#allocation4], 1024  }
  0x75   :  { %3928 = vsyncadd [#allocation4], 4294966272 }
  0x76   :  { %3929 = dma.done.wait [#allocation6], 640  }
  0x77   :  { %3930 = vsyncadd [#allocation6], 4294966656 }
  0x78   :  { %3931 = dma.done.wait [#allocation9], 1024  }
  0x79   :  { %3932 = vsyncadd [#allocation9], 4294966272 }
  0x7a   :  { %3933 = dma.done.wait [#allocation12], 1024  }
  0x7b   :  { %3934 = vsyncadd [#allocation12], 4294966272  ;;  %vm161_vm0 = vcmask 261120   ;;  %v150_v0 = vld [vmem:[%s4720_s2] sm:$0xff]  ;;  %v151_v1 = vld [vmem:[%s4720_s2 + $0x8] sm:$0xff]  ;;  %v3944_v18 = vmov 0.0|0.0  }
  0x7c   :  { %v152_v2 = vld [vmem:[%s4720_s2 + $0x10] sm:$0xff]  ;;  %v3365_v3 = vpack.c.bf16 %v151_v1, %v150_v0  ;;  %v153_v4 = vld [vmem:[%s4720_s2 + $0x18] sm:$0xff]  ;;  %v142_v5 = vld [vmem:[#allocation3] sm:$0xff]  ;;  %vm3945_vm1 = vmmov 0   ;;  %v3946_v27 = vmov 0.0   ;;  %vm529_vm2 = vcmask 1041409  }
  0x7d   :  { %v3369_v6 = vpack.c.bf16 %v153_v4, %v152_v2  ;;  %3119 = vmatprep.mubr.msk.f32.mxu0 %vm161_vm0, %v142_v5  ;;  %v291_v7 = vld [vmem:[#allocation7] sm:$0xff]  ;;  %v292_v8 = vld [vmem:[#allocation7 + $0x8] sm:$0xff]  ;;  %v146_v10 = vld [vmem:[#allocation3 + $0x20] sm:$0xff]  ;;  %vm532_vm3 = vcmask 1042434   ;;  %vm535_vm4 = vcmask 1043459   ;;  %vm538_vm5 = vcmask 1044484  }
  0x7e   :  { %3366 = vmatprep.subr.bf16.mxu0 %v3365_v3  ;;  %v3373_v9 = vpack.c.bf16 %v292_v8, %v291_v7  ;;  %v293_v11 = vld [vmem:[#allocation7 + $0x10] sm:$0xff]  ;;  %v294_v12 = vld [vmem:[#allocation7 + $0x18] sm:$0xff]  ;;  %3145 = vmatprep.mubr.msk.f32.mxu1 %vm161_vm0, %v146_v10  ;;  %v143_v14 = vld [vmem:[#allocation3 + $0x8] sm:$0xff]  ;;  %vm541_vm6 = vcmask 1045509   ;;  %vm544_vm7 = vcmask 1046534   ;;  %vm547_vm8 = vcmask 1047559  }
  0x7f   :  { %3368 = vmatpush3.bf16.msra.mxu0 %v3365_v3  ;;  %v3377_v13 = vpack.c.bf16 %v294_v12, %v293_v11  ;;  %v144_v15 = vld [vmem:[#allocation3 + $0x10] sm:$0xff]  ;;  %v407_v16 = vld [vmem:[#allocation8] sm:$0xff]  ;;  %v145_v19 = vld [vmem:[#allocation3 + $0x18] sm:$0xff]  ;;  %s3948_s1 = smov 112   ;;  %vm1543_vm9 = vcmask 130048   ;;  %vm1532_vm10 = vcmask 392192  }
  0x80   :  { %3370 = vmatprep.subr.bf16.mxu0 %v3369_v6  ;;  %3494 = vmatprep.subr.bf16.mxu1 %v3373_v9  ;;  %v408_v17 = vld [vmem:[#allocation8 + $0x8] sm:$0xff]  ;;  %v147_v20 = vld [vmem:[#allocation3 + $0x28] sm:$0xff]  ;;  %v409_v23 = vld [vmem:[#allocation8 + $0x10] sm:$0xff]  ;;  %vm1874_vm11 = vcmask 253952   ;;  %vm1872_vm12 = vcmask 261121   ;;  %vm2017_vm13 = vcmask 261122  }
  0x81   :  { %3496 = vmatpush3.bf16.msra.mxu1 %v3373_v9  ;;  %v4151_v21 = vpack.c.bf16 %v408_v17, %v407_v16  ;;  %v148_v22 = vld [vmem:[#allocation3 + $0x30] sm:$0xff]  ;;  %v410_v24 = vld [vmem:[#allocation8 + $0x18] sm:$0xff]  ;;  %v149_v25 = vld [vmem:[#allocation3 + $0x38] sm:$0xff]  ;;  %vm2019_vm14 = vcmask 254976   ;;  %vm2162_vm15 = vcmask 261123   ;;  %s3951_s26 = smov 96  }
  0x82   :  { %3495 = vmatprep.subr.bf16.mxu1 %v3377_v13  ;;  %v4159_v26 = vpack.c.bf16 %v410_v24, %v409_v23  ;;  %v2941_v42 = vld [vmem:[%s4721_s3] ss:$0 sm:$0xff]  ;;  %s3947_s3 = smov 16  }
  0x83   :  { %3372 = vmatpush3.bf16.msra.mxu0 %v3369_v6 }
  0x84   :  { %3374 = vmatprep.subr.bf16.mxu0 %v3373_v9 }
  0x85   :  { %3497 = vmatpush3.bf16.msra.mxu1 %v3377_v13 }
  0x86   :  { %3120 = vmatmul.mubr.msk.f32.vlgmr.msra.gmra.mrb[0].mxu0 %vm161_vm0, %v143_v14  ;;  %3387 = vmatprep.subr.bf16.mxu1 %v3944_v18 }
  0x87   :  { %3376 = vmatpush3.bf16.msra.mxu0 %v3373_v9  ;;  %3122 = vmatprep.mubr.msk.f32.mxu0 %vm161_vm0, %v144_v15 }
  0x88   :  { %3378 = vmatprep.subr.bf16.mxu0 %v3377_v13  ;;  %3146 = vmatmul.mubr.msk.f32.vlgmr.msra.gmra.mrb[0].mxu1 %vm161_vm0, %v147_v20 }
  0x89   :  { %3389 = vmatpush3.bf16.msra.mxu1 %v4151_v21  ;;  %3148 = vmatprep.mubr.msk.f32.mxu1 %vm161_vm0, %v148_v22 }
  0x8a   :  { %3123 = vmatmul.mubr.msk.f32.gmra.mrb[2].mxu0 %vm161_vm0, %v145_v19  ;;  %3390 = vmatprep.subr.bf16.mxu1 %v3944_v18 }
  0x8b   :  { %3125 = vmatprep.mubr.msk.f32.mxu0 %vm161_vm0, %v146_v10  ;;  %3380 = vmatpush3.bf16.msra.mxu0 %v3377_v13 }
  0x8c   :  { %3381 = vmatprep.subr.bf16.mxu0 %v3944_v18  ;;  %3149 = vmatmul.mubr.msk.f32.gmra.mrb[2].mxu1 %vm161_vm0, %v149_v25 }
  0x8d   :  { %3392 = vmatpush3.bf16.msra.mxu1 %v4159_v26  ;;  %3170 = vmatprep.mubr.msk.f32.mxu1 %vm3945_vm1, %v3946_v27 }
  0x8e   :  { %3126 = vmatmul.mubr.msk.f32.gmra.mrb[4].mxu0 %vm161_vm0, %v147_v20  ;;  %3399 = vmatprep.subr.bf16.mxu1 %v3944_v18 }
  0x8f   :  { %3128 = vmatprep.mubr.msk.f32.mxu0 %vm161_vm0, %v148_v22 }
  0x92   :  { %3129 = vmatmul.mubr.msk.f32.gmra.mrb[6].mxu0 %vm161_vm0, %v149_v25 }
  0x93   :  { %3139 = vmatprep.mubr.msk.f32.mxu0 %vm161_vm0, %v142_v5 }
  0x96   :  { %3140 = vmatmul.mubr.msk.f32.vlgmr.msra.gmra.mrb[8].mxu0 %vm161_vm0, %v143_v14 }
  0x97   :  { %3383 = vmatpush3.bf16.msra.mxu0 %v4151_v21  ;;  %3142 = vmatprep.mubr.msk.f32.mxu0 %vm161_vm0, %v144_v15 }
  0x98   :  { %3384 = vmatprep.subr.bf16.mxu0 %v3944_v18 }
  0x9a   :  { %3143 = vmatmul.mubr.msk.f32.gmra.mrb[10].mxu0 %vm161_vm0, %v145_v19 }
  0x9b   :  { %3386 = vmatpush3.bf16.msra.mxu0 %v4159_v26  ;;  %3159 = vmatprep.mubr.msk.f32.mxu0 %vm3945_vm1, %v3946_v27 }
  0x9c   :  { %3393 = vmatprep.subr.bf16.mxu0 %v3944_v18 }
  0x9e   :  { %3160 = vmatmul.mubr.f32.vlgmr.msra.gmra.mrb[12].mxu0 %v3946_v27 }
  0x9f   :  { %3395 = vmatpush3.bf16.msra.mxu0 %v4151_v21  ;;  %3181 = vmatprep.mubr.msk.f32.mxu0 %vm3945_vm1, %v3946_v27 }
  0xa0   :  { %3396 = vmatprep.subr.bf16.mxu0 %v3944_v18 }
  0xa3   :  { %3398 = vmatpush3.bf16.msra.mxu0 %v4159_v26 }
  0xa4   :  { %3405 = vmatprep.subr.bf16.mxu0 %v3944_v18 }
 0x159   :  { %v3121_v28 = vpop.f32.mrb[0].mxu0 }
 0x15a   :  { %v252_v29 = vpop.f32.mrb[1].mxu0  ;;  %v4206_v45 = vadd.f32 %v3121_v28, %v2941_v42 }
 0x15b   :  { %v4187_v30 = vpop.f32.mrb[0].mxu1  ;;  %v4208_v46 = vadd.f32 %v2941_v42, %v252_v29 }
 0x15c   :  { %v4189_v31 = vpop.f32.mrb[1].mxu1 }
 0x15d   :  { %v3124_v32 = vpop.f32.mrb[2].mxu0 }
 0x15e   :  { %v262_v33 = vpop.f32.mrb[3].mxu0  ;;  %v4210_v47 = vadd.f32 %v3124_v32, %v2941_v42 }
 0x15f   :  { %v4191_v34 = vpop.f32.mrb[2].mxu1  ;;  %v4212_v48 = vadd.f32 %v2941_v42, %v262_v33 }
 0x160   :  { %v4193_v35 = vpop.f32.mrb[3].mxu1 }
 0x161   :  { %v3127_v36 = vpop.f32.mrb[4].mxu0 }
 0x162   :  { %v272_v37 = vpop.f32.mrb[5].mxu0  ;;  %v4214_v49 = vadd.f32 %v3127_v36, %v2941_v42 }
 0x163   :  { %v4216_v56 = vadd.f32 %v2941_v42, %v272_v37 }
 0x165   :  { %v3130_v38 = vpop.f32.mrb[6].mxu0 }
 0x166   :  { %v282_v39 = vpop.f32.mrb[7].mxu0  ;;  %v4225_v2 = vadd.f32 %v3130_v38, %v2941_v42 }
 0x167   :  { %v4222_v0 = vadd.f32 %v2941_v42, %v282_v39 }
 0x169   :  { %v4195_v40 = vpop.f32.mrb[8].mxu0 }
 0x16a   :  { %v4197_v41 = vpop.f32.mrb[9].mxu0 }
 0x16d   :  { %v4202_v43 = vpop.f32.mrb[10].mxu0 }
 0x16e   :  { %v4204_v44 = vpop.f32.mrb[11].mxu0 }
 0x171   :  { %v484_v50 = vpop.f32.mrb[12].mxu0 }
 0x172   :  { %v489_v51 = vrot.slane %v484_v50, 1  ;;  %v490_v52 = vrot.slane %v484_v50, 2  ;;  %v491_v53 = vrot.slane %v484_v50, 3  ;;  %v492_v54 = vrot.slane %v484_v50, 4  ;;  %v3161_v55 = vpop.f32.mrb[13].mxu0 }
 0x173   :  { %v493_v57 = vrot.slane %v484_v50, 5  ;;  %v494_v58 = vrot.slane %v484_v50, 6  ;;  %v504_v59 = vadd.f32 %v484_v50, %v4208_v46  ;;  %v495_v63 = vrot.slane %v484_v50, 7 }
 0x174   :  { %v505_v60 = vadd.f32 %v489_v51, %v4206_v45  ;;  %v506_v61 = vadd.f32 %v490_v52, %v4212_v48  ;;  %v507_v62 = vadd.f32 %v491_v53, %v4210_v47  ;;  %v508_v1 = vadd.f32 %v492_v54, %v4216_v56 }
 0x175   :  { %3515 = vtanh.f32 %v504_v59  ;;  %v509_v3 = vadd.f32 %v493_v57, %v4214_v49  ;;  %v510_v4 = vadd.f32 %v494_v58, %v4222_v0  ;;  %v511_v5 = vadd.f32 %v495_v63, %v4225_v2 }
 0x176   :  { %3517 = vtanh.f32 %v505_v60 }
 0x177   :  { %3519 = vtanh.f32 %v506_v61 }
 0x178   :  { %3521 = vtanh.f32 %v507_v62 }
 0x179   :  { %3523 = vtanh.f32 %v508_v1 }
 0x17a   :  { %3525 = vtanh.f32 %v509_v3 }
 0x17b   :  { %3527 = vtanh.f32 %v510_v4 }
 0x17c   :  { %3529 = vtanh.f32 %v511_v5 }
 0x17f   :  { %v3516_v6 = vpop.eup %3515 }
 0x180   :  { %v3518_v7 = vpop.eup %3517 }
 0x181   :  { %v3520_v8 = vpop.eup %3519  ;;  %v528_v9 = vrot.slane %v3518_v7, 7 }
 0x182   :  { %v3522_v10 = vpop.eup %3521  ;;  %v531_v11 = vrot.slane %v3520_v8, 6 }
 0x183   :  { %v3524_v12 = vpop.eup %3523  ;;  %v530_v13 = vsel %vm529_vm2, %v528_v9, %v3516_v6  ;;  %v534_v14 = vrot.slane %v3522_v10, 5 }
 0x184   :  { %v3526_v15 = vpop.eup %3525  ;;  %v533_v16 = vsel %vm532_vm3, %v531_v11, %v530_v13  ;;  %v537_v17 = vrot.slane %v3524_v12, 4 }
 0x185   :  { %v3528_v19 = vpop.eup %3527  ;;  %v536_v20 = vsel %vm535_vm4, %v534_v14, %v533_v16  ;;  %v540_v22 = vrot.slane %v3526_v15, 3 }
 0x186   :  { %v3530_v23 = vpop.eup %3529  ;;  %v539_v24 = vsel %vm538_vm5, %v537_v17, %v536_v20  ;;  %v543_v25 = vrot.slane %v3528_v19, 2 }
 0x187   :  { %v542_v28 = vsel %vm541_vm6, %v540_v22, %v539_v24  ;;  %v546_v29 = vrot.slane %v3530_v23, 1 }
 0x188   :  { %v545_v32 = vsel %vm544_vm7, %v543_v25, %v542_v28 }
 0x189   :  { %v548_v33 = vsel %vm547_vm8, %v546_v29, %v545_v32 }
 0x18a   :  { %3171 = vmatmul.mubr.msk.f32.vlgmr.msra.gmra.mrb[4].mxu1 %vm161_vm0, %v548_v33 }
 0x18b   :  { %3401 = vmatpush3.bf16.msra.mxu1 %v4151_v21  ;;  %3192 = vmatprep.mubr.msk.f32.mxu1 %vm3945_vm1, %v3946_v27 }
 0x18c   :  { %3402 = vmatprep.subr.bf16.mxu1 %v3944_v18 }
 0x18f   :  { %3404 = vmatpush3.bf16.msra.mxu1 %v4159_v26 }
 0x190   :  { %3411 = vmatprep.subr.bf16.mxu1 %v3944_v18 }
 0x25d   :  { %v617_v36 = vpop.f32.mrb[4].mxu1 }
 0x25e   :  { %v622_v37 = vrot.slane %v617_v36, 7  ;;  %v623_v38 = vrot.slane %v617_v36, 1  ;;  %v624_v39 = vrot.slane %v617_v36, 2  ;;  %v625_v42 = vrot.slane %v617_v36, 3  ;;  %v3172_v50 = vpop.f32.mrb[5].mxu1 }
 0x25f   :  { %v626_v51 = vrot.slane %v617_v36, 4  ;;  %v638_v52 = vadd.f32 %v617_v36, %v4206_v45  ;;  %v627_v53 = vrot.slane %v617_v36, 5  ;;  %v628_v58 = vrot.slane %v617_v36, 6 }
 0x260   :  { %v637_v54 = vadd.f32 %v622_v37, %v4208_v46  ;;  %v639_v55 = vadd.f32 %v623_v38, %v4212_v48  ;;  %v640_v57 = vadd.f32 %v624_v39, %v4210_v47  ;;  %v641_v59 = vadd.f32 %v625_v42, %v4216_v56 }
 0x261   :  { %3531 = vtanh.f32 %v638_v52  ;;  %v642_v60 = vadd.f32 %v626_v51, %v4214_v49  ;;  %v643_v61 = vadd.f32 %v627_v53, %v4222_v0  ;;  %v644_v62 = vadd.f32 %v628_v58, %v4225_v2 }
 0x262   :  { %3533 = vtanh.f32 %v637_v54 }
 0x263   :  { %3535 = vtanh.f32 %v639_v55 }
 0x264   :  { %3537 = vtanh.f32 %v640_v57 }
 0x265   :  { %3539 = vtanh.f32 %v641_v59 }
 0x266   :  { %3541 = vtanh.f32 %v642_v60 }
 0x267   :  { %3543 = vtanh.f32 %v643_v61 }
 0x268   :  { %3545 = vtanh.f32 %v644_v62 }
 0x26b   :  { %v3532_v63 = vpop.eup %3531 }
 0x26c   :  { %v3534_v1 = vpop.eup %3533 }
 0x26d   :  { %v3536_v3 = vpop.eup %3535  ;;  %v661_v4 = vrot.slane %v3534_v1, 1 }
 0x26e   :  { %v3538_v5 = vpop.eup %3537  ;;  %v663_v6 = vrot.slane %v3536_v3, 7 }
 0x26f   :  { %v3540_v7 = vpop.eup %3539  ;;  %v662_v8 = vsel %vm529_vm2, %v3532_v63, %v661_v4  ;;  %v665_v9 = vrot.slane %v3538_v5, 6 }
 0x270   :  { %v3542_v10 = vpop.eup %3541  ;;  %v664_v11 = vsel %vm532_vm3, %v663_v6, %v662_v8  ;;  %v667_v12 = vrot.slane %v3540_v7, 5 }
 0x271   :  { %v3544_v13 = vpop.eup %3543  ;;  %v666_v14 = vsel %vm535_vm4, %v665_v9, %v664_v11  ;;  %v669_v15 = vrot.slane %v3542_v10, 4 }
 0x272   :  { %v3546_v16 = vpop.eup %3545  ;;  %v668_v17 = vsel %vm538_vm5, %v667_v12, %v666_v14  ;;  %v671_v19 = vrot.slane %v3544_v13, 3 }
 0x273   :  { %v670_v20 = vsel %vm541_vm6, %v669_v15, %v668_v17  ;;  %v673_v22 = vrot.slane %v3546_v16, 2 }
 0x274   :  { %v672_v23 = vsel %vm544_vm7, %v671_v19, %v670_v20 }
 0x275   :  { %v674_v24 = vsel %vm547_vm8, %v673_v22, %v672_v23 }
 0x276   :  { %3182 = vmatmul.mubr.msk.f32.vlgmr.msra.gmra.mrb[14].mxu0 %vm161_vm0, %v674_v24 }
 0x277   :  { %3407 = vmatpush3.bf16.msra.mxu0 %v4151_v21  ;;  %3203 = vmatprep.mubr.msk.f32.mxu0 %vm3945_vm1, %v3946_v27 }
 0x278   :  { %3408 = vmatprep.subr.bf16.mxu0 %v3944_v18 }
 0x27b   :  { %3410 = vmatpush3.bf16.msra.mxu0 %v4159_v26 }
 0x27c   :  { %3417 = vmatprep.subr.bf16.mxu0 %v3944_v18 }
 0x349   :  { %v743_v25 = vpop.f32.mrb[14].mxu0 }
 0x34a   :  { %v748_v28 = vrot.slane %v743_v25, 6  ;;  %v749_v29 = vrot.slane %v743_v25, 7  ;;  %v750_v32 = vrot.slane %v743_v25, 1  ;;  %v751_v33 = vrot.slane %v743_v25, 2  ;;  %v3183_v36 = vpop.f32.mrb[15].mxu0 }
 0x34b   :  { %v752_v37 = vrot.slane %v743_v25, 3  ;;  %v765_v38 = vadd.f32 %v743_v25, %v4212_v48  ;;  %v753_v39 = vrot.slane %v743_v25, 4  ;;  %v754_v52 = vrot.slane %v743_v25, 5 }
 0x34c   :  { %v763_v42 = vadd.f32 %v748_v28, %v4208_v46  ;;  %v764_v50 = vadd.f32 %v749_v29, %v4206_v45  ;;  %v766_v51 = vadd.f32 %v750_v32, %v4210_v47  ;;  %v767_v53 = vadd.f32 %v751_v33, %v4216_v56 }
 0x34d   :  { %3547 = vtanh.f32 %v765_v38  ;;  %v768_v54 = vadd.f32 %v752_v37, %v4214_v49  ;;  %v769_v55 = vadd.f32 %v753_v39, %v4222_v0  ;;  %v770_v57 = vadd.f32 %v754_v52, %v4225_v2 }
 0x34e   :  { %3549 = vtanh.f32 %v763_v42 }
 0x34f   :  { %3551 = vtanh.f32 %v764_v50 }
 0x350   :  { %3553 = vtanh.f32 %v766_v51 }
 0x351   :  { %3555 = vtanh.f32 %v767_v53 }
 0x352   :  { %3557 = vtanh.f32 %v768_v54 }
 0x353   :  { %3559 = vtanh.f32 %v769_v55 }
 0x354   :  { %3561 = vtanh.f32 %v770_v57 }
 0x357   :  { %v3548_v58 = vpop.eup %3547 }
 0x358   :  { %v3550_v59 = vpop.eup %3549 }
 0x359   :  { %v3552_v60 = vpop.eup %3551  ;;  %v787_v61 = vrot.slane %v3550_v59, 2 }
 0x35a   :  { %v3554_v62 = vpop.eup %3553  ;;  %v788_v63 = vrot.slane %v3552_v60, 1 }
 0x35b   :  { %v3556_v1 = vpop.eup %3555  ;;  %v791_v5 = vrot.slane %v3554_v62, 7 }
 0x35c   :  { %v3558_v3 = vpop.eup %3557  ;;  %v789_v4 = vsel %vm529_vm2, %v788_v63, %v787_v61  ;;  %v793_v8 = vrot.slane %v3556_v1, 6 }
 0x35d   :  { %v3560_v6 = vpop.eup %3559  ;;  %v790_v7 = vsel %vm532_vm3, %v3548_v58, %v789_v4  ;;  %v795_v11 = vrot.slane %v3558_v3, 5 }
 0x35e   :  { %v3562_v9 = vpop.eup %3561  ;;  %v792_v10 = vsel %vm535_vm4, %v791_v5, %v790_v7  ;;  %v797_v13 = vrot.slane %v3560_v6, 4 }
 0x35f   :  { %v794_v12 = vsel %vm538_vm5, %v793_v8, %v792_v10  ;;  %v799_v15 = vrot.slane %v3562_v9, 3 }
 0x360   :  { %v796_v14 = vsel %vm541_vm6, %v795_v11, %v794_v12 }
 0x361   :  { %v798_v16 = vsel %vm544_vm7, %v797_v13, %v796_v14 }
 0x362   :  { %v800_v17 = vsel %vm547_vm8, %v799_v15, %v798_v16 }
 0x363   :  { %3193 = vmatmul.mubr.msk.f32.vlgmr.msra.gmra.mrb[6].mxu1 %vm161_vm0, %v800_v17 }
 0x364   :  { %3413 = vmatpush3.bf16.msra.mxu1 %v4151_v21  ;;  %3214 = vmatprep.mubr.msk.f32.mxu1 %vm3945_vm1, %v3946_v27 }
 0x365   :  { %3414 = vmatprep.subr.bf16.mxu1 %v3944_v18 }
 0x368   :  { %3416 = vmatpush3.bf16.msra.mxu1 %v4159_v26 }
 0x369   :  { %3423 = vmatprep.subr.bf16.mxu1 %v3944_v18 }
 0x436   :  { %v869_v19 = vpop.f32.mrb[6].mxu1 }
 0x437   :  { %v874_v20 = vrot.slane %v869_v19, 5  ;;  %v875_v22 = vrot.slane %v869_v19, 6  ;;  %v876_v23 = vrot.slane %v869_v19, 7  ;;  %v877_v24 = vrot.slane %v869_v19, 1  ;;  %v3194_v25 = vpop.f32.mrb[7].mxu1 }
 0x438   :  { %v878_v28 = vrot.slane %v869_v19, 2  ;;  %v892_v29 = vadd.f32 %v869_v19, %v4210_v47  ;;  %v879_v32 = vrot.slane %v869_v19, 3  ;;  %v880_v38 = vrot.slane %v869_v19, 4 }
 0x439   :  { %v889_v33 = vadd.f32 %v874_v20, %v4208_v46  ;;  %v890_v36 = vadd.f32 %v875_v22, %v4206_v45  ;;  %v891_v37 = vadd.f32 %v876_v23, %v4212_v48  ;;  %v893_v39 = vadd.f32 %v877_v24, %v4216_v56 }
 0x43a   :  { %3563 = vtanh.f32 %v892_v29  ;;  %v894_v42 = vadd.f32 %v878_v28, %v4214_v49  ;;  %v895_v50 = vadd.f32 %v879_v32, %v4222_v0  ;;  %v896_v51 = vadd.f32 %v880_v38, %v4225_v2 }
 0x43b   :  { %3565 = vtanh.f32 %v889_v33 }
 0x43c   :  { %3567 = vtanh.f32 %v890_v36 }
 0x43d   :  { %3569 = vtanh.f32 %v891_v37 }
 0x43e   :  { %3571 = vtanh.f32 %v893_v39 }
 0x43f   :  { %3573 = vtanh.f32 %v894_v42 }
 0x440   :  { %3575 = vtanh.f32 %v895_v50 }
 0x441   :  { %3577 = vtanh.f32 %v896_v51 }
 0x444   :  { %v3564_v52 = vpop.eup %3563 }
 0x445   :  { %v3566_v53 = vpop.eup %3565 }
 0x446   :  { %v3568_v54 = vpop.eup %3567  ;;  %v913_v55 = vrot.slane %v3566_v53, 3 }
 0x447   :  { %v3570_v57 = vpop.eup %3569  ;;  %v914_v58 = vrot.slane %v3568_v54, 2 }
 0x448   :  { %v3572_v59 = vpop.eup %3571  ;;  %v916_v60 = vrot.slane %v3570_v57, 1 }
 0x449   :  { %v3574_v61 = vpop.eup %3573  ;;  %v915_v62 = vsel %vm529_vm2, %v914_v58, %v913_v55  ;;  %v919_v3 = vrot.slane %v3572_v59, 7 }
 0x44a   :  { %v3576_v63 = vpop.eup %3575  ;;  %v917_v1 = vsel %vm532_vm3, %v916_v60, %v915_v62  ;;  %v921_v6 = vrot.slane %v3574_v61, 6 }
 0x44b   :  { %v3578_v4 = vpop.eup %3577  ;;  %v918_v5 = vsel %vm535_vm4, %v3564_v52, %v917_v1  ;;  %v923_v8 = vrot.slane %v3576_v63, 5 }
 0x44c   :  { %v920_v7 = vsel %vm538_vm5, %v919_v3, %v918_v5  ;;  %v925_v10 = vrot.slane %v3578_v4, 4 }
 0x44d   :  { %v922_v9 = vsel %vm541_vm6, %v921_v6, %v920_v7 }
 0x44e   :  { %v924_v11 = vsel %vm544_vm7, %v923_v8, %v922_v9 }
 0x44f   :  { %v926_v12 = vsel %vm547_vm8, %v925_v10, %v924_v11 }
 0x450   :  { %3204 = vmatmul.mubr.msk.f32.vlgmr.msra.gmra.mrb[16].mxu0 %vm161_vm0, %v926_v12 }
 0x451   :  { %3419 = vmatpush3.bf16.msra.mxu0 %v4151_v21  ;;  %3225 = vmatprep.mubr.msk.f32.mxu0 %vm3945_vm1, %v3946_v27 }
 0x452   :  { %3420 = vmatprep.subr.bf16.mxu0 %v3944_v18 }
 0x455   :  { %3422 = vmatpush3.bf16.msra.mxu0 %v4159_v26 }
 0x456   :  { %3429 = vmatprep.subr.bf16.mxu0 %v3944_v18 }
 0x523   :  { %v995_v13 = vpop.f32.mrb[16].mxu0 }
 0x524   :  { %v1000_v14 = vrot.slane %v995_v13, 4  ;;  %v1001_v15 = vrot.slane %v995_v13, 5  ;;  %v1002_v16 = vrot.slane %v995_v13, 6  ;;  %v1003_v17 = vrot.slane %v995_v13, 7  ;;  %v3205_v19 = vpop.f32.mrb[17].mxu0 }
 0x525   :  { %v1004_v20 = vrot.slane %v995_v13, 1  ;;  %v1019_v22 = vadd.f32 %v995_v13, %v4216_v56  ;;  %v1005_v23 = vrot.slane %v995_v13, 2  ;;  %v1006_v29 = vrot.slane %v995_v13, 3 }
 0x526   :  { %v1015_v24 = vadd.f32 %v1000_v14, %v4208_v46  ;;  %v1016_v25 = vadd.f32 %v1001_v15, %v4206_v45  ;;  %v1017_v28 = vadd.f32 %v1002_v16, %v4212_v48  ;;  %v1018_v32 = vadd.f32 %v1003_v17, %v4210_v47 }
 0x527   :  { %3579 = vtanh.f32 %v1019_v22  ;;  %v1020_v33 = vadd.f32 %v1004_v20, %v4214_v49  ;;  %v1021_v36 = vadd.f32 %v1005_v23, %v4222_v0  ;;  %v1022_v37 = vadd.f32 %v1006_v29, %v4225_v2 }
 0x528   :  { %3581 = vtanh.f32 %v1015_v24 }
 0x529   :  { %3583 = vtanh.f32 %v1016_v25 }
 0x52a   :  { %3585 = vtanh.f32 %v1017_v28 }
 0x52b   :  { %3587 = vtanh.f32 %v1018_v32 }
 0x52c   :  { %3589 = vtanh.f32 %v1020_v33 }
 0x52d   :  { %3591 = vtanh.f32 %v1021_v36 }
 0x52e   :  { %3593 = vtanh.f32 %v1022_v37 }
 0x531   :  { %v3580_v38 = vpop.eup %3579 }
 0x532   :  { %v3582_v39 = vpop.eup %3581 }
 0x533   :  { %v3584_v42 = vpop.eup %3583  ;;  %v1039_v50 = vrot.slane %v3582_v39, 4 }
 0x534   :  { %v3586_v51 = vpop.eup %3585  ;;  %v1040_v52 = vrot.slane %v3584_v42, 3 }
 0x535   :  { %v3588_v53 = vpop.eup %3587  ;;  %v1042_v54 = vrot.slane %v3586_v51, 2 }
 0x536   :  { %v3590_v55 = vpop.eup %3589  ;;  %v1041_v57 = vsel %vm529_vm2, %v1040_v52, %v1039_v50  ;;  %v1044_v58 = vrot.slane %v3588_v53, 1 }
 0x537   :  { %v3592_v59 = vpop.eup %3591  ;;  %v1043_v60 = vsel %vm532_vm3, %v1042_v54, %v1041_v57  ;;  %v1047_v63 = vrot.slane %v3590_v55, 7 }
 0x538   :  { %v3594_v61 = vpop.eup %3593  ;;  %v1045_v62 = vsel %vm535_vm4, %v1044_v58, %v1043_v60  ;;  %v1049_v3 = vrot.slane %v3592_v59, 6 }
 0x539   :  { %v1046_v1 = vsel %vm538_vm5, %v3580_v38, %v1045_v62  ;;  %v1051_v5 = vrot.slane %v3594_v61, 5 }
 0x53a   :  { %v1048_v4 = vsel %vm541_vm6, %v1047_v63, %v1046_v1 }
 0x53b   :  { %v1050_v6 = vsel %vm544_vm7, %v1049_v3, %v1048_v4 }
 0x53c   :  { %v1052_v7 = vsel %vm547_vm8, %v1051_v5, %v1050_v6 }
 0x53d   :  { %3215 = vmatmul.mubr.msk.f32.vlgmr.msra.gmra.mrb[8].mxu1 %vm161_vm0, %v1052_v7 }
 0x53e   :  { %3425 = vmatpush3.bf16.msra.mxu1 %v4151_v21  ;;  %3236 = vmatprep.mubr.msk.f32.mxu1 %vm3945_vm1, %v3946_v27 }
 0x53f   :  { %3426 = vmatprep.subr.bf16.mxu1 %v3944_v18 }
 0x542   :  { %3428 = vmatpush3.bf16.msra.mxu1 %v4159_v26 }
 0x543   :  { %3435 = vmatprep.subr.bf16.mxu1 %v3944_v18 }
 0x610   :  { %v1121_v8 = vpop.f32.mrb[8].mxu1 }
 0x611   :  { %v1126_v9 = vrot.slane %v1121_v8, 3  ;;  %v1127_v10 = vrot.slane %v1121_v8, 4  ;;  %v1128_v11 = vrot.slane %v1121_v8, 5  ;;  %v1129_v12 = vrot.slane %v1121_v8, 6  ;;  %v3216_v13 = vpop.f32.mrb[9].mxu1 }
 0x612   :  { %v1130_v14 = vrot.slane %v1121_v8, 7  ;;  %v1131_v15 = vrot.slane %v1121_v8, 1  ;;  %v1132_v19 = vrot.slane %v1121_v8, 2  ;;  %v1146_v24 = vadd.f32 %v1121_v8, %v4214_v49 }
 0x613   :  { %v1141_v16 = vadd.f32 %v1126_v9, %v4208_v46  ;;  %v1142_v21 = vadd.f32 %v1127_v10, %v4206_v45  ;;  %v1143_v17 = vadd.f32 %v1128_v11, %v4212_v48  ;;  %v1144_v20 = vadd.f32 %v1129_v12, %v4210_v47 }
 0x614   :  { %v1145_v26 = vadd.f32 %v1130_v14, %v4216_v56  ;;  %v1147_v22 = vadd.f32 %v1131_v15, %v4222_v0  ;;  %v1148_v23 = vadd.f32 %v1132_v19, %v4225_v2 }
 0x615   :  { %3595 = vtanh.f32 %v1141_v16 }
 0x616   :  { %3597 = vtanh.f32 %v1142_v21 }
 0x617   :  { %3599 = vtanh.f32 %v1143_v17 }
 0x618   :  { %3601 = vtanh.f32 %v1144_v20 }
 0x619   :  { %3603 = vtanh.f32 %v1145_v26 }
 0x61a   :  { %3605 = vtanh.f32 %v1147_v22 }
 0x61b   :  { %3607 = vtanh.f32 %v1148_v23 }
 0x61c   :  { %3609 = vtanh.f32 %v1146_v24 }
 0x61f   :  { %v3596_v25 = vpop.eup %3595 }
 0x620   :  { %v3598_v28 = vpop.eup %3597  ;;  %v1165_v29 = vrot.slane %v3596_v25, 5 }
 0x621   :  { %v3600_v32 = vpop.eup %3599  ;;  %v1166_v33 = vrot.slane %v3598_v28, 4 }
 0x622   :  { %v3602_v36 = vpop.eup %3601  ;;  %v1168_v37 = vrot.slane %v3600_v32, 3 }
 0x623   :  { %v3604_v38 = vpop.eup %3603  ;;  %v1167_v39 = vsel %vm529_vm2, %v1166_v33, %v1165_v29  ;;  %v1170_v42 = vrot.slane %v3602_v36, 2 }
 0x624   :  { %v3606_v50 = vpop.eup %3605  ;;  %v1169_v51 = vsel %vm532_vm3, %v1168_v37, %v1167_v39  ;;  %v1172_v52 = vrot.slane %v3604_v38, 1 }
 0x625   :  { %v3608_v53 = vpop.eup %3607  ;;  %v1171_v54 = vsel %vm535_vm4, %v1170_v42, %v1169_v51  ;;  %v1175_v58 = vrot.slane %v3606_v50, 7 }
 0x626   :  { %v3610_v55 = vpop.eup %3609  ;;  %v1173_v57 = vsel %vm538_vm5, %v1172_v52, %v1171_v54  ;;  %v1177_v60 = vrot.slane %v3608_v53, 6 }
 0x627   :  { %v1174_v59 = vsel %vm541_vm6, %v3610_v55, %v1173_v57  ;;  %v1409_v55 = vld [vmem:[#allocation11] sm:$0xff]  ;;  %v1410_v57 = vld [vmem:[#allocation11 + $0x8] sm:$0xff] }
 0x628   :  { %v1176_v61 = vsel %vm544_vm7, %v1175_v58, %v1174_v59  ;;  %v1411_v58 = vld [vmem:[#allocation11 + $0x10] sm:$0xff]  ;;  %v3430_v59 = vpack.c.bf16 %v1410_v57, %v1409_v55 }
 0x629   :  { %v1178_v62 = vsel %vm547_vm8, %v1177_v60, %v1176_v61  ;;  %v1412_v60 = vld [vmem:[#allocation11 + $0x18] sm:$0xff] }
 0x62a   :  { %3226 = vmatmul.mubr.msk.f32.vlgmr.msra.gmra.mrb[18].mxu0 %vm161_vm0, %v1178_v62  ;;  %v3433_v61 = vpack.c.bf16 %v1412_v60, %v1411_v58  ;;  %v1516_v62 = vld [vmem:[#allocation5] sm:$0xff]  ;;  %v412_v60 = vld [vmem:[#allocation10 + $0x8] sm:$0xff] }
 0x62b   :  { %3247 = vmatprep.mubr.msk.f32.mxu0 %vm3945_vm1, %v3946_v27  ;;  %3431 = vmatpush3.bf16.msra.mxu0 %v3430_v59  ;;  %v411_v59 = vld [vmem:[#allocation10] sm:$0xff] }
 0x62c   :  { %3432 = vmatprep.subr.bf16.mxu0 %v3944_v18  ;;  %1518 = vrot.lane.b32.xlu0 %v1516_v62, %s3947_s3 }
 0x62f   :  { %3434 = vmatpush3.bf16.msra.mxu0 %v3433_v61  ;;  %v4398_v61 = vpack.c.bf16 %v412_v60, %v411_v59 }
 0x630   :  { %3444 = vmatprep.subr.bf16.mxu0 %v3944_v18 }
 0x69e   :  { %v1519_v55 = vpop.permute.xlu0 %1518 }
 0x6fd   :  { %v1247_v63 = vpop.f32.mrb[18].mxu0 }
 0x6fe   :  { %v1252_v1 = vrot.slane %v1247_v63, 2  ;;  %v1253_v3 = vrot.slane %v1247_v63, 3  ;;  %v1254_v4 = vrot.slane %v1247_v63, 4  ;;  %v1255_v5 = vrot.slane %v1247_v63, 5  ;;  %v3227_v6 = vpop.f32.mrb[19].mxu0 }
 0x6ff   :  { %v1256_v7 = vrot.slane %v1247_v63, 6  ;;  %v1257_v8 = vrot.slane %v1247_v63, 7  ;;  %v1258_v12 = vrot.slane %v1247_v63, 1  ;;  %v1273_v21 = vadd.f32 %v1247_v63, %v4222_v0 }
 0x700   :  { %v1267_v9 = vadd.f32 %v1252_v1, %v4208_v46  ;;  %v1268_v10 = vadd.f32 %v1253_v3, %v4206_v45  ;;  %v1269_v11 = vadd.f32 %v1254_v4, %v4212_v48  ;;  %v1270_v13 = vadd.f32 %v1255_v5, %v4210_v47 }
 0x701   :  { %v1271_v14 = vadd.f32 %v1256_v7, %v4216_v56  ;;  %v1272_v15 = vadd.f32 %v1257_v8, %v4214_v49  ;;  %v1274_v16 = vadd.f32 %v1258_v12, %v4225_v2 }
 0x702   :  { %3611 = vtanh.f32 %v1267_v9 }
 0x703   :  { %3613 = vtanh.f32 %v1268_v10 }
 0x704   :  { %3615 = vtanh.f32 %v1269_v11 }
 0x705   :  { %3617 = vtanh.f32 %v1270_v13 }
 0x706   :  { %3619 = vtanh.f32 %v1271_v14 }
 0x707   :  { %3621 = vtanh.f32 %v1272_v15 }
 0x708   :  { %3623 = vtanh.f32 %v1274_v16 }
 0x709   :  { %3625 = vtanh.f32 %v1273_v21 }
 0x70c   :  { %v3612_v17 = vpop.eup %3611 }
 0x70d   :  { %v3614_v19 = vpop.eup %3613  ;;  %v1291_v20 = vrot.slane %v3612_v17, 6 }
 0x70e   :  { %v3616_v26 = vpop.eup %3615  ;;  %v1292_v22 = vrot.slane %v3614_v19, 5 }
 0x70f   :  { %v3618_v23 = vpop.eup %3617  ;;  %v1294_v24 = vrot.slane %v3616_v26, 4 }
 0x710   :  { %v3620_v25 = vpop.eup %3619  ;;  %v1293_v28 = vsel %vm529_vm2, %v1292_v22, %v1291_v20  ;;  %v1296_v29 = vrot.slane %v3618_v23, 3 }
 0x711   :  { %v3622_v32 = vpop.eup %3621  ;;  %v1295_v33 = vsel %vm532_vm3, %v1294_v24, %v1293_v28  ;;  %v1298_v36 = vrot.slane %v3620_v25, 2 }
 0x712   :  { %v3624_v37 = vpop.eup %3623  ;;  %v1297_v38 = vsel %vm535_vm4, %v1296_v29, %v1295_v33  ;;  %v1300_v39 = vrot.slane %v3622_v32, 1 }
 0x713   :  { %v1299_v42 = vsel %vm538_vm5, %v1298_v36, %v1297_v38  ;;  %v3626_v50 = vpop.eup %3625  ;;  %v1303_v52 = vrot.slane %v3624_v37, 7  ;;  %v1534_v38 = vld [vmem:[%s4728_s10] sm:$0xff] }
 0x714   :  { %v1301_v51 = vsel %vm541_vm6, %v1300_v39, %v1299_v42  ;;  %v1535_v39 = vld [vmem:[%s4728_s10 + $0x8] sm:$0xff] }
 0x715   :  { %v1302_v53 = vsel %vm544_vm7, %v3626_v50, %v1301_v51  ;;  %v3436_v42 = vpack.c.bf16 %v1535_v39, %v1534_v38  ;;  %v2966_v50 = vld [vmem:[%s4727_s9] ss:$0 sm:$0xff]  ;;  %s3949_s9 = smov 32  }
 0x716   :  { %v1304_v54 = vsel %vm547_vm8, %v1303_v52, %v1302_v53 }
 0x717   :  { %3237 = vmatmul.mubr.msk.f32.vlgmr.msra.gmra.mrb[10].mxu1 %vm161_vm0, %v1304_v54 }
 0x718   :  { %3254 = vmatprep.mubr.msk.f32.mxu1 %vm3945_vm1, %v3946_v27  ;;  %3437 = vmatpush3.bf16.msra.mxu1 %v3436_v42 }
 0x719   :  { %3438 = vmatprep.subr.bf16.mxu1 %v3944_v18 }
 0x7ea   :  { %v1373_v63 = vpop.f32.mrb[10].mxu1 }
 0x7eb   :  { %v1378_v1 = vrot.slane %v1373_v63, 1  ;;  %v1379_v3 = vrot.slane %v1373_v63, 2  ;;  %v1380_v4 = vrot.slane %v1373_v63, 3  ;;  %v1381_v5 = vrot.slane %v1373_v63, 4  ;;  %v3238_v6 = vpop.f32.mrb[11].mxu1 }
 0x7ec   :  { %v1382_v7 = vrot.slane %v1373_v63, 5  ;;  %v1383_v8 = vrot.slane %v1373_v63, 6  ;;  %v1384_v12 = vrot.slane %v1373_v63, 7 }
 0x7ed   :  { %v1393_v9 = vadd.f32 %v1378_v1, %v4208_v46  ;;  %v1394_v10 = vadd.f32 %v1379_v3, %v4206_v45  ;;  %v1395_v11 = vadd.f32 %v1380_v4, %v4212_v48  ;;  %v1396_v13 = vadd.f32 %v1381_v5, %v4210_v47  ;;  %v413_v1 = vld [vmem:[#allocation10 + $0x10] sm:$0xff]  ;;  %v414_v3 = vld [vmem:[#allocation10 + $0x18] sm:$0xff] }
 0x7ee   :  { %v1397_v14 = vadd.f32 %v1382_v7, %v4216_v56  ;;  %v1398_v15 = vadd.f32 %v1383_v8, %v4214_v49  ;;  %v1399_v16 = vadd.f32 %v1384_v12, %v4222_v0  ;;  %v1400_v46 = vadd.f32 %v1373_v63, %v4225_v2  ;;  %v2968_v7 = vld [vmem:[%s4729_s11] ss:$0 sm:$0xff] }
 0x7ef   :  { %3627 = vtanh.f32 %v1393_v9  ;;  %v4407_v4 = vpack.c.bf16 %v414_v3, %v413_v1 }
 0x7f0   :  { %3629 = vtanh.f32 %v1394_v10 }
 0x7f1   :  { %3631 = vtanh.f32 %v1395_v11  ;;  %v2950_v11 = vld [vmem:[%s4723_s5] ss:$0 sm:$0xff] }
 0x7f2   :  { %3633 = vtanh.f32 %v1396_v13  ;;  %v4431_v12 = vadd.f32 %v4187_v30, %v2950_v11  ;;  %v4434_v13 = vadd.f32 %v4195_v40, %v2950_v11  ;;  %v4446_v30 = vadd.f32 %v2950_v11, %v4189_v31 }
 0x7f3   :  { %3635 = vtanh.f32 %v1397_v14  ;;  %v4437_v14 = vadd.f32 %v2950_v11, %v4197_v41  ;;  %v4457_v31 = vadd.f32 %v4191_v34, %v2950_v11 }
 0x7f4   :  { %3637 = vtanh.f32 %v1398_v15  ;;  %v4440_v15 = vadd.f32 %v4202_v43, %v2950_v11 }
 0x7f5   :  { %3639 = vtanh.f32 %v1399_v16  ;;  %v4443_v16 = vadd.f32 %v2950_v11, %v4204_v44 }
 0x7f6   :  { %3641 = vtanh.f32 %v1400_v46 }
 0x7f9   :  { %v3628_v45 = vpop.eup %3627 }
 0x7fa   :  { %v3630_v48 = vpop.eup %3629  ;;  %v1428_v21 = vrot.slane %v3628_v45, 7 }
 0x7fb   :  { %v3632_v47 = vpop.eup %3631  ;;  %v1429_v17 = vrot.slane %v3630_v48, 6 }
 0x7fc   :  { %v3634_v19 = vpop.eup %3633  ;;  %v1431_v56 = vrot.slane %v3632_v47, 5 }
 0x7fd   :  { %v3636_v20 = vpop.eup %3635  ;;  %v1430_v49 = vsel %vm529_vm2, %v1429_v17, %v1428_v21  ;;  %v1433_v26 = vrot.slane %v3634_v19, 4 }
 0x7fe   :  { %v3638_v22 = vpop.eup %3637  ;;  %v1432_v0 = vsel %vm532_vm3, %v1431_v56, %v1430_v49  ;;  %v1435_v23 = vrot.slane %v3636_v20, 3  ;;  %v4453_v49 = vadd.f32 %v2950_v11, %v4193_v35 }
 0x7ff   :  { %v3640_v24 = vpop.eup %3639  ;;  %v1434_v2 = vsel %vm535_vm4, %v1433_v26, %v1432_v0  ;;  %v1437_v25 = vrot.slane %v3638_v22, 2 }
 0x800   :  { %v1436_v28 = vsel %vm538_vm5, %v1435_v23, %v1434_v2  ;;  %v1439_v29 = vrot.slane %v3640_v24, 1  ;;  %v3642_v33 = vpop.eup %3641 }
 0x801   :  { %v1438_v32 = vsel %vm541_vm6, %v1437_v25, %v1436_v28 }
 0x802   :  { %v1440_v36 = vsel %vm544_vm7, %v1439_v29, %v1438_v32 }
 0x803   :  { %v1441_v37 = vsel %vm547_vm8, %v3642_v33, %v1440_v36 }
 0x804   :  { %3248 = vmatmul.mubr.msk.f32.vlgmr.msra.gmra.mrb[20].mxu0 %vm161_vm0, %v1441_v37 }
 0x805   :  { %3276 = vmatprep.mubr.msk.f32.mxu0 %vm3945_vm1, %v3946_v27  ;;  %3446 = vmatpush3.bf16.msra.mxu0 %v4398_v61 }
 0x806   :  { %3447 = vmatprep.subr.bf16.mxu0 %v3944_v18 }
 0x809   :  { %3449 = vmatpush3.bf16.msra.mxu0 %v4407_v4 }
 0x80a   :  { %3456 = vmatprep.subr.bf16.mxu0 %v3944_v18 }
 0x8d7   :  { %v1510_v51 = vpop.f32.mrb[20].mxu0 }
 0x8d8   :  { %v1511_v52 = vadd.f32 %v2966_v50, %v1510_v51  ;;  %v3249_v53 = vpop.f32.mrb[21].mxu0 }
 0x8da   :  { %v1514_v54 = vmul.f32 1.442695, %v1511_v52 }
 0x8dc   :  { %3643 = vpow2.f32 %v1514_v54 }
 0x8e6   :  { %v3644_v57 = vpop.eup %3643 }
 0x8e7   :  { %v1521_v58 = vmul.f32 %v3644_v57, %v1519_v55 }
 0x8e9   :  { %1523 = vrot.lane.b32.xlu0 %v1521_v58, %s3948_s1 }
 0x95b   :  { %v1524_v62 = vpop.permute.xlu0 %1523 }
 0x95c   :  { %v1526_v63 = vadd.f32 %v1524_v62, %v1511_v52 }
 0x95e   :  { %1528 = vrot.lane.b32.xlu0 %v1526_v63, %s3949_s9  ;;  %3255 = vmatmul.mubr.msk.f32.vlgmr.msra.gmra.mrb[12].mxu1 %vm1543_vm9, %v1526_v63  ;;  %vm2164_vm9 = vcmask 256000  }
 0x95f   :  { %3440 = vmatpush3.bf16.msra.mxu1 %v4398_v61  ;;  %3265 = vmatprep.mubr.msk.f32.mxu1 %vm3945_vm1, %v3946_v27 }
 0x960   :  { %3441 = vmatprep.subr.bf16.mxu1 %v3944_v18 }
 0x963   :  { %3443 = vmatpush3.bf16.msra.mxu1 %v4407_v4 }
 0x964   :  { %3450 = vmatprep.subr.bf16.mxu1 %v3944_v18 }
 0x9d0   :  { %v1529_v5 = vpop.permute.xlu0 %1528 }
 0x9d1   :  { %v1531_v6 = vsel %vm161_vm0, %v1511_v52, %v1529_v5 }
 0x9d2   :  { %1533 = vst.msk [vmem:[%s4733_s15] sm:$0xff] %vm1532_vm10, %v1531_v6  ;;  %vm2307_vm10 = vcmask 261124  }
 0xa31   :  { %v1612_v8 = vpop.f32.mrb[12].mxu1 }
 0xa32   :  { %v1613_v9 = vadd.f32 %v2968_v7, %v1612_v8  ;;  %v3256_v10 = vpop.f32.mrb[13].mxu1 }
 0xa34   :  { %3266 = vmatmul.mubr.msk.f32.vlgmr.msra.gmra.mrb[14].mxu1 %vm161_vm0, %v1613_v9 }
 0xa35   :  { %3452 = vmatpush3.bf16.msra.mxu1 %v4398_v61  ;;  %3287 = vmatprep.mubr.msk.f32.mxu1 %vm3945_vm1, %v3946_v27 }
 0xa36   :  { %3453 = vmatprep.subr.bf16.mxu1 %v3944_v18 }
 0xa39   :  { %3455 = vmatpush3.bf16.msra.mxu1 %v4407_v4 }
 0xa3a   :  { %3462 = vmatprep.subr.bf16.mxu1 %v3944_v18 }
 0xb07   :  { %v1685_v46 = vpop.f32.mrb[14].mxu1 }
 0xb08   :  { %v1690_v45 = vrot.slane %v1685_v46, 1  ;;  %v1691_v48 = vrot.slane %v1685_v46, 2  ;;  %v1692_v21 = vrot.slane %v1685_v46, 3  ;;  %v1693_v47 = vrot.slane %v1685_v46, 4  ;;  %v3267_v17 = vpop.f32.mrb[15].mxu1 }
 0xb09   :  { %v1694_v40 = vrot.slane %v1685_v46, 5  ;;  %v1705_v19 = vadd.f32 %v1685_v46, %v4437_v14  ;;  %v1695_v41 = vrot.slane %v1685_v46, 6  ;;  %v1696_v20 = vrot.slane %v1685_v46, 7 }
 0xb0a   :  { %v1706_v56 = vadd.f32 %v1690_v45, %v4434_v13  ;;  %v1707_v43 = vadd.f32 %v1691_v48, %v4443_v16  ;;  %v1708_v44 = vadd.f32 %v1692_v21, %v4440_v15  ;;  %v1709_v26 = vadd.f32 %v1693_v47, %v4446_v30 }
 0xb0b   :  { %3645 = vtanh.f32 %v1705_v19  ;;  %v1710_v22 = vadd.f32 %v1694_v40, %v4431_v12  ;;  %v1711_v0 = vadd.f32 %v1695_v41, %v4453_v49  ;;  %v1712_v23 = vadd.f32 %v1696_v20, %v4457_v31 }
 0xb0c   :  { %3647 = vtanh.f32 %v1706_v56 }
 0xb0d   :  { %3649 = vtanh.f32 %v1707_v43 }
 0xb0e   :  { %3651 = vtanh.f32 %v1708_v44 }
 0xb0f   :  { %3653 = vtanh.f32 %v1709_v26 }
 0xb10   :  { %3655 = vtanh.f32 %v1710_v22 }
 0xb11   :  { %3657 = vtanh.f32 %v1711_v0 }
 0xb12   :  { %3659 = vtanh.f32 %v1712_v23 }
 0xb15   :  { %v3646_v35 = vpop.eup %3645 }
 0xb16   :  { %v3648_v24 = vpop.eup %3647 }
 0xb17   :  { %v3650_v2 = vpop.eup %3649  ;;  %v1729_v25 = vrot.slane %v3648_v24, 7 }
 0xb18   :  { %v3652_v28 = vpop.eup %3651  ;;  %v1731_v34 = vrot.slane %v3650_v2, 6 }
 0xb19   :  { %v3654_v29 = vpop.eup %3653  ;;  %v1730_v32 = vsel %vm529_vm2, %v1729_v25, %v3646_v35  ;;  %v1733_v33 = vrot.slane %v3652_v28, 5 }
 0xb1a   :  { %v3656_v36 = vpop.eup %3655  ;;  %v1732_v37 = vsel %vm532_vm3, %v1731_v34, %v1730_v32  ;;  %v1735_v38 = vrot.slane %v3654_v29, 4 }
 0xb1b   :  { %v3658_v39 = vpop.eup %3657  ;;  %v1734_v42 = vsel %vm535_vm4, %v1733_v33, %v1732_v37  ;;  %v1737_v50 = vrot.slane %v3656_v36, 3 }
 0xb1c   :  { %v3660_v51 = vpop.eup %3659  ;;  %v1736_v52 = vsel %vm538_vm5, %v1735_v38, %v1734_v42  ;;  %v1739_v53 = vrot.slane %v3658_v39, 2 }
 0xb1d   :  { %v1738_v54 = vsel %vm541_vm6, %v1737_v50, %v1736_v52  ;;  %v1741_v55 = vrot.slane %v3660_v51, 1 }
 0xb1e   :  { %v1740_v57 = vsel %vm544_vm7, %v1739_v53, %v1738_v54 }
 0xb1f   :  { %v1742_v58 = vsel %vm547_vm8, %v1741_v55, %v1740_v57 }
 0xb20   :  { %1744 = vst.msk [vmem:[#allocation2] sm:$0xff] %vm161_vm0, %v1742_v58  ;;  %3277 = vmatmul.mubr.msk.f32.vlgmr.msra.gmra.mrb[22].mxu0 %vm161_vm0, %v1742_v58 }
 0xb21   :  { %3458 = vmatpush3.bf16.msra.mxu0 %v4398_v61  ;;  %3298 = vmatprep.mubr.msk.f32.mxu0 %vm3945_vm1, %v3946_v27 }
 0xb22   :  { %3459 = vmatprep.subr.bf16.mxu0 %v3944_v18 }
 0xb25   :  { %3461 = vmatpush3.bf16.msra.mxu0 %v4407_v4 }
 0xb26   :  { %3468 = vmatprep.subr.bf16.mxu0 %v3944_v18 }
 0xbf3   :  { %v1813_v59 = vpop.f32.mrb[22].mxu0 }
 0xbf4   :  { %v1818_v60 = vrot.slane %v1813_v59, 7  ;;  %v1819_v62 = vrot.slane %v1813_v59, 1  ;;  %v1820_v63 = vrot.slane %v1813_v59, 2  ;;  %v1821_v1 = vrot.slane %v1813_v59, 3  ;;  %v3278_v3 = vpop.f32.mrb[23].mxu0 }
 0xbf5   :  { %v1822_v5 = vrot.slane %v1813_v59, 4  ;;  %v1823_v6 = vrot.slane %v1813_v59, 5  ;;  %v1834_v7 = vadd.f32 %v1813_v59, %v4434_v13  ;;  %v1824_v8 = vrot.slane %v1813_v59, 6 }
 0xbf6   :  { %v1833_v9 = vadd.f32 %v1818_v60, %v4437_v14  ;;  %v1835_v10 = vadd.f32 %v1819_v62, %v4443_v16  ;;  %v1836_v11 = vadd.f32 %v1820_v63, %v4440_v15  ;;  %v1837_v46 = vadd.f32 %v1821_v1, %v4446_v30 }
 0xbf7   :  { %3661 = vtanh.f32 %v1834_v7  ;;  %v1838_v45 = vadd.f32 %v1822_v5, %v4431_v12  ;;  %v1839_v48 = vadd.f32 %v1823_v6, %v4453_v49  ;;  %v1840_v21 = vadd.f32 %v1824_v8, %v4457_v31 }
 0xbf8   :  { %3663 = vtanh.f32 %v1833_v9 }
 0xbf9   :  { %3665 = vtanh.f32 %v1835_v10 }
 0xbfa   :  { %3667 = vtanh.f32 %v1836_v11 }
 0xbfb   :  { %3669 = vtanh.f32 %v1837_v46 }
 0xbfc   :  { %3671 = vtanh.f32 %v1838_v45 }
 0xbfd   :  { %3673 = vtanh.f32 %v1839_v48 }
 0xbfe   :  { %3675 = vtanh.f32 %v1840_v21 }
 0xc01   :  { %v3662_v47 = vpop.eup %3661 }
 0xc02   :  { %v3664_v17 = vpop.eup %3663  ;;  %v1857_v40 = vrot.slane %v3662_v47, 7 }
 0xc03   :  { %v3666_v19 = vpop.eup %3665  ;;  %v1876_v41 = vrot.slane %v3664_v17, 1 }
 0xc04   :  { %v3668_v56 = vpop.eup %3667  ;;  %v1858_v43 = vsel %vm532_vm3, %v1857_v40, %v3664_v17  ;;  %v1859_v44 = vrot.slane %v3666_v19, 6  ;;  %v1878_v20 = vrot.slane %v3666_v19, 7 }
 0xc05   :  { %v3670_v26 = vpop.eup %3669  ;;  %v1861_v22 = vrot.slane %v3668_v56, 5  ;;  %v1877_v0 = vsel %vm529_vm2, %v3662_v47, %v1876_v41  ;;  %v1880_v23 = vrot.slane %v3668_v56, 6 }
 0xc06   :  { %v3672_v35 = vpop.eup %3671  ;;  %v1860_v24 = vsel %vm535_vm4, %v1859_v44, %v1858_v43  ;;  %v1863_v2 = vrot.slane %v3670_v26, 4  ;;  %v1879_v25 = vsel %vm532_vm3, %v1878_v20, %v1877_v0  ;;  %v1882_v28 = vrot.slane %v3670_v26, 5 }
 0xc07   :  { %v3674_v34 = vpop.eup %3673  ;;  %v1862_v29 = vsel %vm538_vm5, %v1861_v22, %v1860_v24  ;;  %v1865_v32 = vrot.slane %v3672_v35, 3  ;;  %v1881_v33 = vsel %vm535_vm4, %v1880_v23, %v1879_v25  ;;  %v1884_v36 = vrot.slane %v3672_v35, 4 }
 0xc08   :  { %v3676_v37 = vpop.eup %3675  ;;  %v1864_v38 = vsel %vm541_vm6, %v1863_v2, %v1862_v29  ;;  %v1867_v39 = vrot.slane %v3674_v34, 2  ;;  %v1883_v42 = vsel %vm538_vm5, %v1882_v28, %v1881_v33  ;;  %v1886_v50 = vrot.slane %v3674_v34, 3 }
 0xc09   :  { %v1866_v51 = vsel %vm544_vm7, %v1865_v32, %v1864_v38  ;;  %v1869_v52 = vrot.slane %v3676_v37, 1  ;;  %v1885_v53 = vsel %vm541_vm6, %v1884_v36, %v1883_v42  ;;  %v1888_v54 = vrot.slane %v3676_v37, 2 }
 0xc0a   :  { %v1868_v55 = vsel %vm547_vm8, %v1867_v39, %v1866_v51  ;;  %v1887_v57 = vsel %vm544_vm7, %v1886_v50, %v1885_v53 }
 0xc0b   :  { %1875 = vst.msk [vmem:[#allocation2 + $0xf] sm:$0x1] %vm1874_vm11, %v1869_v52  ;;  %v1889_v58 = vsel %vm547_vm8, %v1888_v54, %v1887_v57  ;;  %vm2309_vm11 = vcmask 257024  }
 0xc0c   :  { %1873 = vst.msk [vmem:[#allocation2 + $0x7] sm:$0xfe] %vm1872_vm12, %v1868_v55  ;;  %3288 = vmatmul.mubr.msk.f32.vlgmr.msra.gmra.mrb[16].mxu1 %vm161_vm0, %v1889_v58  ;;  %vm2454_vm12 = vcmask 258048  }
 0xc0d   :  { %3464 = vmatpush3.bf16.msra.mxu1 %v4398_v61  ;;  %3309 = vmatprep.mubr.msk.f32.mxu1 %vm3945_vm1, %v3946_v27 }
 0xc0e   :  { %3465 = vmatprep.subr.bf16.mxu1 %v3944_v18 }
 0xc11   :  { %3467 = vmatpush3.bf16.msra.mxu1 %v4407_v4 }
 0xc12   :  { %3474 = vmatprep.subr.bf16.mxu1 %v3944_v18 }
 0xcdf   :  { %v1958_v59 = vpop.f32.mrb[16].mxu1 }
 0xce0   :  { %v1963_v60 = vrot.slane %v1958_v59, 6  ;;  %v1964_v62 = vrot.slane %v1958_v59, 7  ;;  %v1965_v63 = vrot.slane %v1958_v59, 1  ;;  %v1966_v1 = vrot.slane %v1958_v59, 2  ;;  %v3289_v3 = vpop.f32.mrb[17].mxu1 }
 0xce1   :  { %v1967_v5 = vrot.slane %v1958_v59, 3  ;;  %v1968_v6 = vrot.slane %v1958_v59, 4  ;;  %v1980_v7 = vadd.f32 %v1958_v59, %v4443_v16  ;;  %v1969_v8 = vrot.slane %v1958_v59, 5 }
 0xce2   :  { %v1978_v9 = vadd.f32 %v1963_v60, %v4437_v14  ;;  %v1979_v10 = vadd.f32 %v1964_v62, %v4434_v13  ;;  %v1981_v11 = vadd.f32 %v1965_v63, %v4440_v15  ;;  %v1982_v46 = vadd.f32 %v1966_v1, %v4446_v30 }
 0xce3   :  { %3677 = vtanh.f32 %v1980_v7  ;;  %v1983_v45 = vadd.f32 %v1967_v5, %v4431_v12  ;;  %v1984_v48 = vadd.f32 %v1968_v6, %v4453_v49  ;;  %v1985_v21 = vadd.f32 %v1969_v8, %v4457_v31 }
 0xce4   :  { %3679 = vtanh.f32 %v1978_v9 }
 0xce5   :  { %3681 = vtanh.f32 %v1979_v10 }
 0xce6   :  { %3683 = vtanh.f32 %v1981_v11 }
 0xce7   :  { %3685 = vtanh.f32 %v1982_v46 }
 0xce8   :  { %3687 = vtanh.f32 %v1983_v45 }
 0xce9   :  { %3689 = vtanh.f32 %v1984_v48 }
 0xcea   :  { %3691 = vtanh.f32 %v1985_v21 }
 0xced   :  { %v3678_v47 = vpop.eup %3677 }
 0xcee   :  { %v3680_v17 = vpop.eup %3679  ;;  %v2004_v20 = vrot.slane %v3678_v47, 6 }
 0xcef   :  { %v3682_v40 = vpop.eup %3681  ;;  %v2021_v19 = vrot.slane %v3680_v17, 2 }
 0xcf0   :  { %v3684_v41 = vpop.eup %3683  ;;  %v2002_v56 = vrot.slane %v3682_v40, 7  ;;  %v2022_v43 = vrot.slane %v3682_v40, 1 }
 0xcf1   :  { %v3686_v44 = vpop.eup %3685  ;;  %v2006_v26 = vrot.slane %v3684_v41, 5  ;;  %v2025_v24 = vrot.slane %v3684_v41, 7 }
 0xcf2   :  { %v3688_v22 = vpop.eup %3687  ;;  %v2003_v0 = vsel %vm535_vm4, %v2002_v56, %v3680_v17  ;;  %v2008_v23 = vrot.slane %v3686_v44, 4  ;;  %v2023_v35 = vsel %vm529_vm2, %v2022_v43, %v2021_v19  ;;  %v2027_v29 = vrot.slane %v3686_v44, 6 }
 0xcf3   :  { %v3690_v2 = vpop.eup %3689  ;;  %v2005_v25 = vsel %vm538_vm5, %v2004_v20, %v2003_v0  ;;  %v2010_v28 = vrot.slane %v3688_v22, 3  ;;  %v2024_v34 = vsel %vm532_vm3, %v3678_v47, %v2023_v35  ;;  %v2029_v38 = vrot.slane %v3688_v22, 5 }
 0xcf4   :  { %v3692_v32 = vpop.eup %3691  ;;  %v2007_v33 = vsel %vm541_vm6, %v2006_v26, %v2005_v25  ;;  %v2012_v36 = vrot.slane %v3690_v2, 2  ;;  %v2026_v37 = vsel %vm535_vm4, %v2025_v24, %v2024_v34  ;;  %v2031_v51 = vrot.slane %v3690_v2, 4 }
 0xcf5   :  { %v2009_v39 = vsel %vm544_vm7, %v2008_v23, %v2007_v33  ;;  %v2013_v42 = vrot.slane %v3692_v32, 1  ;;  %v2028_v50 = vsel %vm538_vm5, %v2027_v29, %v2026_v37  ;;  %v2033_v53 = vrot.slane %v3692_v32, 3 }
 0xcf6   :  { %v2030_v52 = vsel %vm541_vm6, %v2029_v38, %v2028_v50  ;;  %v2011_v54 = vsel %vm547_vm8, %v2010_v28, %v2009_v39 }
 0xcf7   :  { %v2014_v55 = vsel %vm529_vm2, %v2013_v42, %v2012_v36  ;;  %v2032_v57 = vsel %vm544_vm7, %v2031_v51, %v2030_v52  ;;  %2018 = vst.msk [vmem:[#allocation2 + $0xe] sm:$0xfc] %vm2017_vm13, %v2011_v54  ;;  %vm2597_vm13 = vcmask 261126  }
 0xcf8   :  { %v2034_v58 = vsel %vm547_vm8, %v2033_v53, %v2032_v57  ;;  %2020 = vst.msk [vmem:[#allocation2 + $0x16] sm:$0x3] %vm2019_vm14, %v2014_v55  ;;  %vm2599_vm14 = vcmask 259072  }
 0xcf9   :  { %3299 = vmatmul.mubr.msk.f32.vlgmr.msra.gmra.mrb[24].mxu0 %vm161_vm0, %v2034_v58 }
 0xcfa   :  { %3470 = vmatpush3.bf16.msra.mxu0 %v4398_v61  ;;  %3320 = vmatprep.mubr.msk.f32.mxu0 %vm3945_vm1, %v3946_v27 }
 0xcfb   :  { %3471 = vmatprep.subr.bf16.mxu0 %v3944_v18 }
 0xcfe   :  { %3473 = vmatpush3.bf16.msra.mxu0 %v4407_v4 }
 0xcff   :  { %3480 = vmatprep.subr.bf16.mxu0 %v3944_v18 }
 0xdcc   :  { %v2103_v59 = vpop.f32.mrb[24].mxu0 }
 0xdcd   :  { %v2108_v60 = vrot.slane %v2103_v59, 5  ;;  %v2109_v62 = vrot.slane %v2103_v59, 6  ;;  %v2110_v63 = vrot.slane %v2103_v59, 7  ;;  %v2111_v1 = vrot.slane %v2103_v59, 1  ;;  %v3300_v3 = vpop.f32.mrb[25].mxu0 }
 0xdce   :  { %v2112_v5 = vrot.slane %v2103_v59, 2  ;;  %v2113_v6 = vrot.slane %v2103_v59, 3  ;;  %v2126_v7 = vadd.f32 %v2103_v59, %v4440_v15  ;;  %v2114_v8 = vrot.slane %v2103_v59, 4 }
 0xdcf   :  { %v2123_v9 = vadd.f32 %v2108_v60, %v4437_v14  ;;  %v2124_v10 = vadd.f32 %v2109_v62, %v4434_v13  ;;  %v2125_v11 = vadd.f32 %v2110_v63, %v4443_v16  ;;  %v2127_v46 = vadd.f32 %v2111_v1, %v4446_v30 }
 0xdd0   :  { %3693 = vtanh.f32 %v2126_v7  ;;  %v2128_v45 = vadd.f32 %v2112_v5, %v4431_v12  ;;  %v2129_v48 = vadd.f32 %v2113_v6, %v4453_v49  ;;  %v2130_v21 = vadd.f32 %v2114_v8, %v4457_v31 }
 0xdd1   :  { %3695 = vtanh.f32 %v2123_v9 }
 0xdd2   :  { %3697 = vtanh.f32 %v2124_v10 }
 0xdd3   :  { %3699 = vtanh.f32 %v2125_v11 }
 0xdd4   :  { %3701 = vtanh.f32 %v2127_v46 }
 0xdd5   :  { %3703 = vtanh.f32 %v2128_v45 }
 0xdd6   :  { %3705 = vtanh.f32 %v2129_v48 }
 0xdd7   :  { %3707 = vtanh.f32 %v2130_v21 }
 0xdda   :  { %v3694_v47 = vpop.eup %3693 }
 0xddb   :  { %v3696_v17 = vpop.eup %3695  ;;  %v2151_v23 = vrot.slane %v3694_v47, 5 }
 0xddc   :  { %v3698_v40 = vpop.eup %3697  ;;  %v2166_v19 = vrot.slane %v3696_v17, 3 }
 0xddd   :  { %v3700_v41 = vpop.eup %3699  ;;  %v2147_v56 = vrot.slane %v3698_v40, 7  ;;  %v2167_v43 = vrot.slane %v3698_v40, 2 }
 0xdde   :  { %v3702_v44 = vpop.eup %3701  ;;  %v2149_v20 = vrot.slane %v3700_v41, 6  ;;  %v2169_v26 = vrot.slane %v3700_v41, 1 }
 0xddf   :  { %v3704_v22 = vpop.eup %3703  ;;  %v2148_v0 = vsel %vm538_vm5, %v2147_v56, %v3696_v17  ;;  %v2153_v35 = vrot.slane %v3702_v44, 4  ;;  %v2168_v24 = vsel %vm529_vm2, %v2167_v43, %v2166_v19  ;;  %v2172_v29 = vrot.slane %v3702_v44, 7 }
 0xde0   :  { %v3706_v2 = vpop.eup %3705  ;;  %v2150_v25 = vsel %vm541_vm6, %v2149_v20, %v2148_v0  ;;  %v2155_v28 = vrot.slane %v3704_v22, 3  ;;  %v2170_v34 = vsel %vm532_vm3, %v2169_v26, %v2168_v24  ;;  %v2174_v38 = vrot.slane %v3704_v22, 6 }
 0xde1   :  { %v3708_v32 = vpop.eup %3707  ;;  %v2152_v33 = vsel %vm544_vm7, %v2151_v23, %v2150_v25  ;;  %v2156_v36 = vrot.slane %v3706_v2, 2  ;;  %v2171_v37 = vsel %vm535_vm4, %v3694_v47, %v2170_v34  ;;  %v2176_v50 = vrot.slane %v3706_v2, 5 }
 0xde2   :  { %v2158_v39 = vrot.slane %v3708_v32, 1  ;;  %v2173_v42 = vsel %vm538_vm5, %v2172_v29, %v2171_v37  ;;  %v2154_v51 = vsel %vm547_vm8, %v2153_v35, %v2152_v33  ;;  %v2178_v54 = vrot.slane %v3708_v32, 4 }
 0xde3   :  { %v2157_v52 = vsel %vm529_vm2, %v2156_v36, %v2155_v28  ;;  %v2175_v53 = vsel %vm541_vm6, %v2174_v38, %v2173_v42  ;;  %2163 = vst.msk [vmem:[#allocation2 + $0x15] sm:$0xf8] %vm2162_vm15, %v2154_v51  ;;  %vm2899_vm15 = vcmask 523520  }
 0xde4   :  { %v2159_v55 = vsel %vm532_vm3, %v2158_v39, %v2157_v52  ;;  %v2177_v57 = vsel %vm544_vm7, %v2176_v50, %v2175_v53 }
 0xde5   :  { %v2179_v58 = vsel %vm547_vm8, %v2178_v54, %v2177_v57  ;;  %2165 = vst.msk [vmem:[#allocation2 + $0x1d] sm:$0x7] %vm2164_vm9, %v2159_v55  ;;  %vm2905_vm9 = vcmask 785920  }
 0xde6   :  { %3310 = vmatmul.mubr.msk.f32.vlgmr.msra.gmra.mrb[18].mxu1 %vm161_vm0, %v2179_v58 }
 0xde7   :  { %3476 = vmatpush3.bf16.msra.mxu1 %v4398_v61  ;;  %3331 = vmatprep.mubr.msk.f32.mxu1 %vm3945_vm1, %v3946_v27 }
 0xde8   :  { %3477 = vmatprep.subr.bf16.mxu1 %v3944_v18 }
 0xdeb   :  { %3479 = vmatpush3.bf16.msra.mxu1 %v4407_v4 }
 0xeb9   :  { %v2248_v59 = vpop.f32.mrb[18].mxu1 }
 0xeba   :  { %v2253_v60 = vrot.slane %v2248_v59, 4  ;;  %v2254_v62 = vrot.slane %v2248_v59, 5  ;;  %v2255_v63 = vrot.slane %v2248_v59, 6  ;;  %v2256_v1 = vrot.slane %v2248_v59, 7  ;;  %v3311_v3 = vpop.f32.mrb[19].mxu1 }
 0xebb   :  { %v2257_v5 = vrot.slane %v2248_v59, 1  ;;  %v2258_v6 = vrot.slane %v2248_v59, 2  ;;  %v2272_v7 = vadd.f32 %v2248_v59, %v4446_v30  ;;  %v2259_v8 = vrot.slane %v2248_v59, 3  ;;  %v2754_v59 = vld [vmem:[#allocation13] sm:$0xff] }
 0xebc   :  { %v2268_v9 = vadd.f32 %v2253_v60, %v4437_v14  ;;  %v2269_v10 = vadd.f32 %v2254_v62, %v4434_v13  ;;  %v2270_v11 = vadd.f32 %v2255_v63, %v4443_v16  ;;  %v2271_v46 = vadd.f32 %v2256_v1, %v4440_v15  ;;  %v2755_v60 = vld [vmem:[#allocation13 + $0x8] sm:$0xff] }
 0xebd   :  { %3709 = vtanh.f32 %v2272_v7  ;;  %v2273_v45 = vadd.f32 %v2257_v5, %v4431_v12  ;;  %v2274_v48 = vadd.f32 %v2258_v6, %v4453_v49  ;;  %v2275_v21 = vadd.f32 %v2259_v8, %v4457_v31 }
 0xebe   :  { %3711 = vtanh.f32 %v2268_v9  ;;  %v4595_v62 = vpack.c.bf16 %v2755_v60, %v2754_v59 }
 0xebf   :  { %3713 = vtanh.f32 %v2269_v10 }
 0xec0   :  { %3715 = vtanh.f32 %v2270_v11  ;;  %3487 = vmatprep.subr.bf16.mxu1 %v4595_v62 }
 0xec1   :  { %3717 = vtanh.f32 %v2271_v46 }
 0xec2   :  { %3719 = vtanh.f32 %v2273_v45 }
 0xec3   :  { %3721 = vtanh.f32 %v2274_v48 }
 0xec4   :  { %3723 = vtanh.f32 %v2275_v21 }
 0xec7   :  { %v3710_v47 = vpop.eup %3709 }
 0xec8   :  { %v3712_v17 = vpop.eup %3711  ;;  %v2298_v28 = vrot.slane %v3710_v47, 4 }
 0xec9   :  { %v3714_v40 = vpop.eup %3713  ;;  %v2311_v19 = vrot.slane %v3712_v17, 4 }
 0xeca   :  { %v3716_v41 = vpop.eup %3715  ;;  %v2292_v56 = vrot.slane %v3714_v40, 7  ;;  %v2312_v43 = vrot.slane %v3714_v40, 3 }
 0xecb   :  { %v3718_v44 = vpop.eup %3717  ;;  %v2294_v20 = vrot.slane %v3716_v41, 6  ;;  %v2314_v26 = vrot.slane %v3716_v41, 2 }
 0xecc   :  { %v3720_v22 = vpop.eup %3719  ;;  %v2293_v0 = vsel %vm541_vm6, %v2292_v56, %v3712_v17  ;;  %v2296_v23 = vrot.slane %v3718_v44, 5  ;;  %v2313_v35 = vsel %vm529_vm2, %v2312_v43, %v2311_v19  ;;  %v2316_v24 = vrot.slane %v3718_v44, 1 }
 0xecd   :  { %v3722_v2 = vpop.eup %3721  ;;  %v2295_v25 = vsel %vm544_vm7, %v2294_v20, %v2293_v0  ;;  %v2299_v34 = vrot.slane %v3720_v22, 3  ;;  %v2315_v29 = vsel %vm532_vm3, %v2314_v26, %v2313_v35  ;;  %v2319_v37 = vrot.slane %v3720_v22, 7 }
 0xece   :  { %v3724_v32 = vpop.eup %3723  ;;  %v2301_v33 = vrot.slane %v3722_v2, 2  ;;  %v2317_v36 = vsel %vm535_vm4, %v2316_v24, %v2315_v29  ;;  %v2297_v38 = vsel %vm547_vm8, %v2296_v23, %v2295_v25  ;;  %v2321_v51 = vrot.slane %v3722_v2, 6 }
 0xecf   :  { %v2300_v39 = vsel %vm529_vm2, %v2299_v34, %v2298_v28  ;;  %v2303_v42 = vrot.slane %v3724_v32, 1  ;;  %v2318_v50 = vsel %vm538_vm5, %v3710_v47, %v2317_v36  ;;  %2308 = vst.msk [vmem:[#allocation2 + $0x1c] sm:$0xf0] %vm2307_vm10, %v2297_v38  ;;  %v2323_v54 = vrot.slane %v3724_v32, 5  ;;  %v2756_v36 = vld [vmem:[#allocation13 + $0x10] sm:$0xff] }
 0xed0   :  { %v2302_v52 = vsel %vm532_vm3, %v2301_v33, %v2300_v39  ;;  %v2320_v53 = vsel %vm541_vm6, %v2319_v37, %v2318_v50  ;;  %v2757_v37 = vld [vmem:[#allocation13 + $0x18] sm:$0xff]  ;;  %vm2742_vm10 = vcmask 261127  }
 0xed1   :  { %v2304_v55 = vsel %vm535_vm4, %v2303_v42, %v2302_v52  ;;  %v2322_v57 = vsel %vm544_vm7, %v2321_v51, %v2320_v53 }
 0xed2   :  { %v2324_v58 = vsel %vm547_vm8, %v2323_v54, %v2322_v57  ;;  %2310 = vst.msk [vmem:[#allocation2 + $0x24] sm:$0xf] %vm2309_vm11, %v2304_v55  ;;  %vm2744_vm11 = vcmask 260096  }
 0xed3   :  { %3321 = vmatmul.mubr.msk.f32.vlgmr.msra.gmra.mrb[26].mxu0 %vm161_vm0, %v2324_v58  ;;  %v3490_v58 = vpack.c.bf16 %v2757_v37, %v2756_v36 }
 0xed4   :  { %3482 = vmatpush3.bf16.msra.mxu0 %v4398_v61  ;;  %3342 = vmatprep.mubr.msk.f32.mxu0 %vm3945_vm1, %v3946_v27  ;;  %vm2452_vm1 = vcmask 261125  }
 0xed5   :  { %3483 = vmatprep.subr.bf16.mxu0 %v3944_v18 }
 0xed8   :  { %3485 = vmatpush3.bf16.msra.mxu0 %v4407_v4 }
 0xfa6   :  { %v2393_v63 = vpop.f32.mrb[26].mxu0 }
 0xfa7   :  { %v2398_v1 = vrot.slane %v2393_v63, 3  ;;  %v2399_v3 = vrot.slane %v2393_v63, 4  ;;  %v2400_v5 = vrot.slane %v2393_v63, 5  ;;  %v2401_v6 = vrot.slane %v2393_v63, 6  ;;  %v3322_v7 = vpop.f32.mrb[27].mxu0 }
 0xfa8   :  { %v2402_v61 = vrot.slane %v2393_v63, 7  ;;  %v2403_v8 = vrot.slane %v2393_v63, 1  ;;  %v2418_v27 = vadd.f32 %v2393_v63, %v4431_v12  ;;  %v2404_v9 = vrot.slane %v2393_v63, 2  ;;  %v2746_v63 = vld [vmem:[#allocation2] sm:$0xff] }
 0xfa9   :  { %v2413_v18 = vadd.f32 %v2398_v1, %v4437_v14  ;;  %v2414_v4 = vadd.f32 %v2399_v3, %v4434_v13  ;;  %v2415_v10 = vadd.f32 %v2400_v5, %v4443_v16  ;;  %v2416_v11 = vadd.f32 %v2401_v6, %v4440_v15  ;;  %v2747_v1 = vld [vmem:[#allocation2 + $0x8] sm:$0xff]  ;;  %v2748_v3 = vld [vmem:[#allocation2 + $0x10] sm:$0xff]  ;;  %v2749_v5 = vld [vmem:[#allocation2 + $0x18] sm:$0xff] }
 0xfaa   :  { %3725 = vtanh.f32 %v2418_v27  ;;  %v2417_v46 = vadd.f32 %v2402_v61, %v4446_v30  ;;  %v2419_v45 = vadd.f32 %v2403_v8, %v4453_v49  ;;  %v2420_v48 = vadd.f32 %v2404_v9, %v4457_v31  ;;  %v2750_v6 = vld [vmem:[#allocation2 + $0x20] sm:$0xff] }
 0xfab   :  { %3727 = vtanh.f32 %v2413_v18 }
 0xfac   :  { %3729 = vtanh.f32 %v2414_v4 }
 0xfad   :  { %3731 = vtanh.f32 %v2415_v10 }
 0xfae   :  { %3733 = vtanh.f32 %v2416_v11 }
 0xfaf   :  { %3735 = vtanh.f32 %v2417_v46 }
 0xfb0   :  { %3737 = vtanh.f32 %v2419_v45 }
 0xfb1   :  { %3739 = vtanh.f32 %v2420_v48 }
 0xfb4   :  { %v3726_v21 = vpop.eup %3725 }
 0xfb5   :  { %v3728_v47 = vpop.eup %3727  ;;  %v2444_v32 = vrot.slane %v3726_v21, 3 }
 0xfb6   :  { %v3730_v17 = vpop.eup %3729  ;;  %v2456_v40 = vrot.slane %v3728_v47, 5 }
 0xfb7   :  { %v3732_v19 = vpop.eup %3731  ;;  %v2437_v41 = vrot.slane %v3730_v17, 7  ;;  %v2457_v56 = vrot.slane %v3730_v17, 4 }
 0xfb8   :  { %v3734_v43 = vpop.eup %3733  ;;  %v2439_v44 = vrot.slane %v3732_v19, 6  ;;  %v2459_v20 = vrot.slane %v3732_v19, 3  ;;  %v4639_v19 = vld [vmem:[%s4731_s13] ss:$0 sm:$0xff]  ;;  %s3950_s13 = smov 64  }
 0xfb9   :  { %v3736_v26 = vpop.eup %3735  ;;  %v2438_v22 = vsel %vm544_vm7, %v2437_v41, %v3728_v47  ;;  %v2441_v0 = vrot.slane %v3734_v43, 5  ;;  %v2458_v23 = vsel %vm529_vm2, %v2457_v56, %v2456_v40  ;;  %v2461_v35 = vrot.slane %v3734_v43, 2 }
 0xfba   :  { %v3738_v24 = vpop.eup %3737  ;;  %v2442_v2 = vrot.slane %v3736_v26, 4  ;;  %v2460_v25 = vsel %vm532_vm3, %v2459_v20, %v2458_v23  ;;  %v2463_v28 = vrot.slane %v3736_v26, 1  ;;  %v2440_v34 = vsel %vm547_vm8, %v2439_v44, %v2438_v22 }
 0xfbb   :  { %v3740_v29 = vpop.eup %3739  ;;  %v2462_v33 = vsel %vm535_vm4, %v2461_v35, %v2460_v25  ;;  %2453 = vst.msk [vmem:[#allocation2 + $0x23] sm:$0xe0] %vm2452_vm1, %v2440_v34  ;;  %v2446_v39 = vrot.slane %v3738_v24, 2  ;;  %v2466_v50 = vrot.slane %v3738_v24, 7 }
 0xfbc   :  { %v2443_v38 = vsel %vm529_vm2, %v2442_v2, %v2441_v0  ;;  %v2464_v42 = vsel %vm538_vm5, %v2463_v28, %v2462_v33  ;;  %v2448_v52 = vrot.slane %v3740_v29, 1  ;;  %v2468_v54 = vrot.slane %v3740_v29, 6 }
 0xfbd   :  { %v2445_v51 = vsel %vm532_vm3, %v2444_v32, %v2443_v38  ;;  %v2465_v53 = vsel %vm541_vm6, %v3726_v21, %v2464_v42 }
 0xfbe   :  { %v2447_v55 = vsel %vm535_vm4, %v2446_v39, %v2445_v51  ;;  %v2467_v57 = vsel %vm544_vm7, %v2466_v50, %v2465_v53 }
 0xfbf   :  { %v2449_v59 = vsel %vm538_vm5, %v2448_v52, %v2447_v55  ;;  %v2469_v60 = vsel %vm547_vm8, %v2468_v54, %v2467_v57 }
 0xfc0   :  { %3332 = vmatmul.mubr.msk.f32.vlgmr.msra.gmra.mrb[20].mxu1 %vm161_vm0, %v2469_v60  ;;  %2455 = vst.msk [vmem:[#allocation2 + $0x2b] sm:$0x1f] %vm2454_vm12, %v2449_v59 }
 0xfc1   :  { %3489 = vmatpush3.bf16.msra.mxu1 %v4595_v62  ;;  %3353 = vmatprep.mubr.msk.f32.mxu1 %vm161_vm0, %v2746_v63 }
 0xfc2   :  { %3491 = vmatprep.subr.bf16.mxu1 %v3490_v58 }
 0xfc5   :  { %3493 = vmatpush3.bf16.msra.mxu1 %v3490_v58 }
 0xfc7   :  { %v2751_v7 = vld [vmem:[#allocation2 + $0x28] sm:$0xff] }
 0xfc8   :  { %3354 = vmatmul.mubr.msk.f32.vlgmr.msra.gmra.mrb[22].mxu1 %vm161_vm0, %v2747_v1 }
 0xfc9   :  { %3356 = vmatprep.mubr.msk.f32.mxu1 %vm161_vm0, %v2748_v3 }
 0xfcc   :  { %3357 = vmatmul.mubr.msk.f32.gmra.mrb[24].mxu1 %vm161_vm0, %v2749_v5 }
 0xfcd   :  { %3359 = vmatprep.mubr.msk.f32.mxu1 %vm161_vm0, %v2750_v6 }
 0xfd0   :  { %3360 = vmatmul.mubr.msk.f32.gmra.mrb[26].mxu1 %vm161_vm0, %v2751_v7 }
0x1093   :  { %v2538_v62 = vpop.f32.mrb[20].mxu1 }
0x1094   :  { %v2543_v61 = vrot.slane %v2538_v62, 2  ;;  %v2544_v8 = vrot.slane %v2538_v62, 3  ;;  %v2545_v27 = vrot.slane %v2538_v62, 4  ;;  %v2546_v9 = vrot.slane %v2538_v62, 5  ;;  %v3333_v18 = vpop.f32.mrb[21].mxu1 }
0x1095   :  { %v2547_v4 = vrot.slane %v2538_v62, 6  ;;  %v2548_v10 = vrot.slane %v2538_v62, 7  ;;  %v2564_v11 = vadd.f32 %v2538_v62, %v4453_v49  ;;  %v2549_v46 = vrot.slane %v2538_v62, 1 }
0x1096   :  { %v2558_v45 = vadd.f32 %v2543_v61, %v4437_v14  ;;  %v2559_v48 = vadd.f32 %v2544_v8, %v4434_v13  ;;  %v2560_v21 = vadd.f32 %v2545_v27, %v4443_v16  ;;  %v2561_v47 = vadd.f32 %v2546_v9, %v4440_v15 }
0x1097   :  { %3741 = vtanh.f32 %v2564_v11  ;;  %v2562_v17 = vadd.f32 %v2547_v4, %v4446_v30  ;;  %v2563_v40 = vadd.f32 %v2548_v10, %v4431_v12  ;;  %v2565_v41 = vadd.f32 %v2549_v46, %v4457_v31 }
0x1098   :  { %3743 = vtanh.f32 %v2558_v45 }
0x1099   :  { %3745 = vtanh.f32 %v2559_v48 }
0x109a   :  { %3747 = vtanh.f32 %v2560_v21 }
0x109b   :  { %3749 = vtanh.f32 %v2561_v47  ;;  %v3355_v56 = vpop.f32.mrb[22].mxu1 }
0x109c   :  { %3751 = vtanh.f32 %v2562_v17  ;;  %v2861_v43 = vadd.f32 %v3355_v56, %v4639_v19  ;;  %v2855_v44 = vpop.f32.mrb[23].mxu1 }
0x109d   :  { %3753 = vtanh.f32 %v2563_v40  ;;  %v2856_v20 = vadd.f32 %v4639_v19, %v2855_v44 }
0x109e   :  { %2896 = vrot.lane.b32.xlu1 %v2861_v43, %s3949_s9  ;;  %3755 = vtanh.f32 %v2565_v41 }
0x109f   :  { %2894 = vst.msk [vmem:[%s4732_s14] sm:$0xff] %vm161_vm0, %v2856_v20  ;;  %v3358_v26 = vpop.f32.mrb[24].mxu1 }
0x10a0   :  { %v2865_v22 = vpop.f32.mrb[25].mxu1  ;;  %v2871_v7 = vadd.f32 %v3358_v26, %v4639_v19 }
0x10a1   :  { %v3742_v0 = vpop.eup %3741  ;;  %v2866_v23 = vadd.f32 %v4639_v19, %v2865_v22 }
0x10a2   :  { %v3744_v35 = vpop.eup %3743  ;;  %v2591_v6 = vrot.slane %v3742_v0, 2 }
0x10a3   :  { %v3746_v24 = vpop.eup %3745  ;;  %v3361_v2 = vpop.f32.mrb[26].mxu1  ;;  %2902 = vrot.lane.b32.xlu1 %v2866_v23, %s3950_s13  ;;  %v2601_v25 = vrot.slane %v3744_v35, 6 }
0x10a4   :  { %v3748_v28 = vpop.eup %3747  ;;  %v2582_v34 = vrot.slane %v3746_v24, 7  ;;  %v2881_v29 = vadd.f32 %v3361_v2, %v4639_v19  ;;  %v2875_v32 = vpop.f32.mrb[27].mxu1  ;;  %v2602_v33 = vrot.slane %v3746_v24, 5 }
0x10a5   :  { %v3750_v36 = vpop.eup %3749  ;;  %v2584_v37 = vrot.slane %v3748_v28, 6  ;;  %v2876_v38 = vadd.f32 %v4639_v19, %v2875_v32  ;;  %v2604_v39 = vrot.slane %v3748_v28, 4 }
0x10a6   :  { %v3752_v42 = vpop.eup %3751  ;;  %v2585_v50 = vrot.slane %v3750_v36, 5  ;;  %v2603_v51 = vsel %vm529_vm2, %v2602_v33, %v2601_v25  ;;  %v2606_v52 = vrot.slane %v3750_v36, 3  ;;  %v2583_v53 = vsel %vm547_vm8, %v2582_v34, %v3744_v35 }
0x10a7   :  { %v3754_v54 = vpop.eup %3753  ;;  %v2587_v55 = vrot.slane %v3752_v42, 4  ;;  %2913 = vst.msk [vmem:[%s4732_s14 + $0x8] sm:$0xff] %vm161_vm0, %v2876_v38  ;;  %2915 = vrot.lane.b32.xlu1 %v2881_v29, %s3949_s9  ;;  %v2605_v57 = vsel %vm532_vm3, %v2604_v39, %v2603_v51  ;;  %v2608_v58 = vrot.slane %v3752_v42, 2 }
0x10a8   :  { %2598 = vst.msk [vmem:[#allocation2 + $0x2a] sm:$0xc0] %vm2597_vm13, %v2583_v53  ;;  %v3756_v59 = vpop.eup %3755  ;;  %v2586_v60 = vsel %vm529_vm2, %v2585_v50, %v2584_v37  ;;  %v2589_v63 = vrot.slane %v3754_v54, 3  ;;  %v2607_v1 = vsel %vm535_vm4, %v2606_v52, %v2605_v57  ;;  %v2610_v3 = vrot.slane %v3754_v54, 1 }
0x10a9   :  { %v2588_v5 = vsel %vm532_vm3, %v2587_v55, %v2586_v60  ;;  %v2609_v62 = vsel %vm538_vm5, %v2608_v58, %v2607_v1  ;;  %v2593_v8 = vrot.slane %v3756_v59, 1  ;;  %v2613_v9 = vrot.slane %v3756_v59, 7 }
0x10aa   :  { %v2590_v61 = vsel %vm535_vm4, %v2589_v63, %v2588_v5  ;;  %v2611_v27 = vsel %vm541_vm6, %v2610_v3, %v2609_v62 }
0x10ab   :  { %v2592_v18 = vsel %vm538_vm5, %v2591_v6, %v2590_v61  ;;  %2908 = vrot.lane.b32.xlu1 %v2871_v7, %s3951_s26  ;;  %v2612_v4 = vsel %vm544_vm7, %v3742_v0, %v2611_v27 }
0x10ac   :  { %v2594_v10 = vsel %vm541_vm6, %v2593_v8, %v2592_v18  ;;  %v2614_v11 = vsel %vm547_vm8, %v2613_v9, %v2612_v4  ;;  %vm2911_vm8 = vcmask 1048320  }
0x10ad   :  { %3343 = vmatmul.mubr.msk.f32.vlgmr.msra.gmra.mrb[28].mxu0 %vm161_vm0, %v2614_v11  ;;  %2600 = vst.msk [vmem:[#allocation2 + $0x32] sm:$0x3f] %vm2599_vm14, %v2594_v10 }
0x10b4   :  { %v2752_v46 = vld [vmem:[#allocation2 + $0x30] sm:$0xff] }
0x10b5   :  { %3362 = vmatprep.mubr.msk.f32.mxu1 %vm161_vm0, %v2752_v46 }
0x1110   :  { %v2897_v45 = vpop.permute.xlu1 %2896 }
0x1111   :  { %2900 = vst.msk [vmem:[%s4732_s14] sm:$0xff] %vm2899_vm15, %v2897_v45 }
0x1115   :  { %v2903_v48 = vpop.permute.xlu1 %2902 }
0x1116   :  { %2906 = vst.msk [vmem:[%s4732_s14] sm:$0xff] %vm2905_vm9, %v2903_v48 }
0x1119   :  { %v2916_v21 = vpop.permute.xlu1 %2915 }
0x111a   :  { %2918 = vst.msk [vmem:[%s4732_s14 + $0x8] sm:$0xff] %vm2899_vm15, %v2916_v21 }
0x111d   :  { %v2909_v47 = vpop.permute.xlu1 %2908 }
0x111e   :  { %2912 = vst.msk [vmem:[%s4732_s14] sm:$0xff] %vm2911_vm8, %v2909_v47 }
0x1180   :  { %v2683_v17 = vpop.f32.mrb[28].mxu0 }
0x1181   :  { %v2688_v40 = vrot.slane %v2683_v17, 1  ;;  %v2689_v41 = vrot.slane %v2683_v17, 2  ;;  %v2690_v56 = vrot.slane %v2683_v17, 3  ;;  %v2691_v43 = vrot.slane %v2683_v17, 4  ;;  %v3344_v44 = vpop.f32.mrb[29].mxu0 }
0x1182   :  { %v2692_v20 = vrot.slane %v2683_v17, 5  ;;  %v2693_v26 = vrot.slane %v2683_v17, 6  ;;  %v2710_v22 = vadd.f32 %v2683_v17, %v4457_v31  ;;  %v2694_v0 = vrot.slane %v2683_v17, 7 }
0x1183   :  { %v2703_v23 = vadd.f32 %v2688_v40, %v4437_v14  ;;  %v2704_v35 = vadd.f32 %v2689_v41, %v4434_v13  ;;  %v2705_v24 = vadd.f32 %v2690_v56, %v4443_v16  ;;  %v2706_v2 = vadd.f32 %v2691_v43, %v4440_v15 }
0x1184   :  { %3757 = vtanh.f32 %v2710_v22  ;;  %v2707_v25 = vadd.f32 %v2692_v20, %v4446_v30  ;;  %v2708_v28 = vadd.f32 %v2693_v26, %v4431_v12  ;;  %v2709_v34 = vadd.f32 %v2694_v0, %v4453_v49 }
0x1185   :  { %3759 = vtanh.f32 %v2703_v23 }
0x1186   :  { %3761 = vtanh.f32 %v2704_v35 }
0x1187   :  { %3763 = vtanh.f32 %v2705_v24 }
0x1188   :  { %3765 = vtanh.f32 %v2706_v2 }
0x1189   :  { %3767 = vtanh.f32 %v2707_v25 }
0x118a   :  { %3769 = vtanh.f32 %v2708_v28 }
0x118b   :  { %3771 = vtanh.f32 %v2709_v34 }
0x118e   :  { %v3758_v13 = vpop.eup %3757 }
0x118f   :  { %v3760_v14 = vpop.eup %3759  ;;  %v2738_v52 = vrot.slane %v3758_v13, 1 }
0x1190   :  { %v3762_v16 = vpop.eup %3761  ;;  %2743 = vst.msk [vmem:[#allocation2 + $0x31] sm:$0x80] %vm2742_vm10, %v3760_v14 }
0x1191   :  { %v3764_v15 = vpop.eup %3763  ;;  %v2727_v31 = vrot.slane %v3762_v16, 7 }
0x1192   :  { %v3766_v29 = vpop.eup %3765  ;;  %v2728_v30 = vrot.slane %v3764_v15, 6 }
0x1193   :  { %v3768_v32 = vpop.eup %3767  ;;  %v2730_v33 = vrot.slane %v3766_v29, 5 }
0x1194   :  { %v3770_v12 = vpop.eup %3769  ;;  %v2729_v36 = vsel %vm529_vm2, %v2728_v30, %v2727_v31  ;;  %v2732_v49 = vrot.slane %v3768_v32, 4 }
0x1195   :  { %v3772_v37 = vpop.eup %3771  ;;  %v2731_v38 = vsel %vm532_vm3, %v2730_v33, %v2729_v36  ;;  %v2734_v39 = vrot.slane %v3770_v12, 3 }
0x1196   :  { %v2733_v42 = vsel %vm535_vm4, %v2732_v49, %v2731_v38  ;;  %v2736_v50 = vrot.slane %v3772_v37, 2 }
0x1197   :  { %v2735_v51 = vsel %vm538_vm5, %v2734_v39, %v2733_v42 }
0x1198   :  { %v2737_v53 = vsel %vm541_vm6, %v2736_v50, %v2735_v51 }
0x1199   :  { %v2739_v54 = vsel %vm544_vm7, %v2738_v52, %v2737_v53 }
0x119a   :  { %2745 = vst.msk [vmem:[#allocation2 + $0x39] sm:$0x7f] %vm2744_vm11, %v2739_v54 }
0x11a1   :  { %v2753_v55 = vld [vmem:[#allocation2 + $0x38] sm:$0xff] }
0x11a2   :  { %3363 = vmatmul.mubr.msk.f32.gmra.mrb[28].mxu1 %vm161_vm0, %v2753_v55 }
0x1275   :  { %v3364_v57 = vpop.f32.mrb[28].mxu1 }
0x1276   :  { %v2885_v58 = vpop.f32.mrb[29].mxu1  ;;  %v2891_v60 = vadd.f32 %v3364_v57, %v4639_v19 }
0x1277   :  { %v2886_v59 = vadd.f32 %v4639_v19, %v2885_v58 }
0x1279   :  { %2920 = vrot.lane.b32.xlu0 %v2886_v59, %s3950_s13 }
0x127d   :  { %2925 = vrot.lane.b32.xlu0 %v2891_v60, %s3951_s26 }
0x12eb   :  { %v2921_v63 = vpop.permute.xlu0 %2920 }
0x12ec   :  { %2923 = vst.msk [vmem:[%s4732_s14 + $0x8] sm:$0xff] %vm2905_vm9, %v2921_v63 }
0x12ef   :  { %v2926_v1 = vpop.permute.xlu0 %2925 }
0x12f0   :  { %2928 = vst.msk [vmem:[%s4732_s14 + $0x8] sm:$0xff] %vm2911_vm8, %v2926_v1 }
0x12f1   :  { %2937 = vsyncpa [#allocation4], 1 }
0x12f2   :  { %2938 = vsyncpa [#allocation6], 1 }
0x12f3   :  { %2939 = vsyncpa [#allocation9], 1 }
0x12f4   :  { %2940 = vsyncpa [#allocation12], 1 }

</bundles_post_ra>
